<compile_context>
chip_gen: v7x
topology: tpu7x:2x2x1
jax: 0.10.0
libtpu: 0.0.40
codegen_flags: <defaults>
</compile_context>

<pallas_src>
import jax
import jax.numpy as jnp
from jax.experimental import pallas as pl
from jax.experimental.pallas import tpu as pltpu


# ------------------------------------------------------------------
# fused conv-as-matmul (M,K)@(K,C) -> BatchNorm(inference) -> ReLU
# ------------------------------------------------------------------
def _conv_bn_relu_kernel(p_ref, w_ref, scale_ref, shift_ref, out_ref):
    acc = jnp.dot(p_ref[...], w_ref[...], preferred_element_type=jnp.float32)
    h = acc * scale_ref[...] + shift_ref[...]          # folded BatchNorm (inference)
    out_ref[...] = jnp.maximum(h, 0.0).astype(out_ref.dtype)


def _pallas_conv_bn_relu(patches, w_flat, scale, shift, out_dtype):
    M, K = patches.shape
    C = w_flat.shape[1]
    return pl.pallas_call(
        _conv_bn_relu_kernel,
        out_shape=jax.ShapeDtypeStruct((M, C), out_dtype),
        grid=(1,),
        in_specs=[
            pl.BlockSpec((M, K), lambda i: (0, 0)),
            pl.BlockSpec((K, C), lambda i: (0, 0)),
            pl.BlockSpec((1, C), lambda i: (0, 0)),
            pl.BlockSpec((1, C), lambda i: (0, 0)),
        ],
        out_specs=pl.BlockSpec((M, C), lambda i: (0, 0)),
        compiler_params=pltpu.CompilerParams(dimension_semantics=("arbitrary",)),
    )(patches, w_flat, scale.reshape(1, C), shift.reshape(1, C))


# ------------------------------------------------------------------
# fused conv -> BN -> ReLU -> MaxPool2d(kernel=3, stride=2, padding=1)
# (the pool is fully unrolled: spatial grid is only 8x8 -> 4x4 here)
# ------------------------------------------------------------------
def _make_conv_bn_relu_pool_kernel(n_batch, h_in, w_in, h_out, w_out):
    def kernel(p_ref, w_ref, scale_ref, shift_ref, out_ref):
        acc = jnp.dot(p_ref[...], w_ref[...], preferred_element_type=jnp.float32)
        h = jnp.maximum(acc * scale_ref[...] + shift_ref[...], 0.0)  # (N*H*W, C)

        # rows of h are ordered (n, y, x); pool window for output (i, j) covers
        # y in {2i-1, 2i, 2i+1} and x in {2j-1, 2j, 2j+1}, clipped to bounds
        # (equivalent to PyTorch's -inf padding).
        for n in range(n_batch):
            base = n * h_in * w_in
            for i in range(h_out):
                ys = [y for y in (2 * i - 1, 2 * i, 2 * i + 1) if 0 <= y < h_in]
                v = h[base + ys[0] * w_in: base + ys[0] * w_in + w_in, :]
                for y in ys[1:]:
                    v = jnp.maximum(v, h[base + y * w_in: base + y * w_in + w_in, :])
                # v: (W, C) = per-column max over the vertical window
                for j in range(w_out):
                    xs = [x for x in (2 * j - 1, 2 * j, 2 * j + 1) if 0 <= x < w_in]
                    o = v[xs[0]:xs[0] + 1, :]
                    for x in xs[1:]:
                        o = jnp.maximum(o, v[x:x + 1, :])
                    row = n * h_out * w_out + i * w_out + j
                    out_ref[pl.ds(row, 1), :] = o
    return kernel


def _pallas_conv_bn_relu_pool(patches, w_flat, scale, shift,
                              n_batch, h_in, w_in, h_out, w_out):
    M, K = patches.shape
    C = w_flat.shape[1]
    kernel = _make_conv_bn_relu_pool_kernel(n_batch, h_in, w_in, h_out, w_out)
    return pl.pallas_call(
        kernel,
        out_shape=jax.ShapeDtypeStruct((n_batch * h_out * w_out, C), jnp.float32),
        grid=(1,),
        in_specs=[
            pl.BlockSpec((M, K), lambda i: (0, 0)),
            pl.BlockSpec((K, C), lambda i: (0, 0)),
            pl.BlockSpec((1, C), lambda i: (0, 0)),
            pl.BlockSpec((1, C), lambda i: (0, 0)),
        ],
        out_specs=pl.BlockSpec((n_batch * h_out * w_out, C), lambda i: (0, 0)),
        compiler_params=pltpu.CompilerParams(dimension_semantics=("arbitrary",)),
    )(patches, w_flat, scale.reshape(1, C), shift.reshape(1, C))


# ------------------------------------------------------------------
# glue: im2col for 3x3 conv, padding=1, dilation=1 (tiny arrays -> XLA)
# tap order (kh, kw, cin) matches w_hwio.reshape(9*Cin, Cout)
# ------------------------------------------------------------------
def _im2col_3x3(x_nhwc, stride):
    N, H, W, C = x_nhwc.shape
    Ho = (H + 2 - 3) // stride + 1
    Wo = (W + 2 - 3) // stride + 1
    xp = jnp.pad(x_nhwc, ((0, 0), (1, 1), (1, 1), (0, 0)))
    taps = [xp[:, dh:dh + stride * (Ho - 1) + 1:stride,
               dw:dw + stride * (Wo - 1) + 1:stride, :]
            for dh in range(3) for dw in range(3)]
    patches = jnp.concatenate(taps, axis=-1).reshape(N * Ho * Wo, 9 * C)
    return patches, Ho, Wo


def _fold_bn(gamma, beta, mean, var, eps=1e-5):
    scale = gamma / jnp.sqrt(var + eps)
    shift = beta - mean * scale
    return scale.astype(jnp.float32), shift.astype(jnp.float32)


# ------------------------------------------------------------------
# full forward (matches FeatureMap.forward, inference mode)
# ------------------------------------------------------------------
def feature_map_forward(x_nchw, params):
    # x_nchw: (N, 3, H, W) float32, PyTorch layout
    x = jnp.transpose(x_nchw, (0, 2, 3, 1))            # -> NHWC
    N = x.shape[0]

    # TODO(synk): BatchNorm uses running statistics (inference); training-mode
    # batch statistics are not implemented.

    def conv_block(h, w_hwio, bn, stride, out_dtype):
        cin, cout = w_hwio.shape[2], w_hwio.shape[3]
        patches, Ho, Wo = _im2col_3x3(h, stride)
        scale, shift = _fold_bn(*bn)
        y = _pallas_conv_bn_relu(
            patches.astype(jnp.bfloat16),
            w_hwio.reshape(9 * cin, cout).astype(jnp.bfloat16),
            scale, shift, out_dtype)
        return y.reshape(N, Ho, Wo, cout)

    # block1: 3 -> 64, stride 2   | block2: 64 -> 64, stride 1
    a1 = conv_block(x, params['w1'], params['bn1'], stride=2, out_dtype=jnp.bfloat16)
    a2 = conv_block(a1, params['w2'], params['bn2'], stride=1, out_dtype=jnp.bfloat16)

    # block3 (64 -> 128, stride 1) with the 3x3/stride-2 max-pool fused in
    cin, cout = params['w3'].shape[2], params['w3'].shape[3]
    patches, Ho, Wo = _im2col_3x3(a2, 1)
    scale, shift = _fold_bn(*params['bn3'])
    Hp = (Ho + 2 - 3) // 2 + 1
    Wp = (Wo + 2 - 3) // 2 + 1
    out = _pallas_conv_bn_relu_pool(
        patches.astype(jnp.bfloat16),
        params['w3'].reshape(9 * cin, cout).astype(jnp.bfloat16),
        scale, shift, N, Ho, Wo, Hp, Wp)

    out = out.reshape(N, Hp, Wp, cout)
    return jnp.transpose(out, (0, 3, 1, 2))            # back to NCHW


# ------------------------------------------------------------------
# deterministic synthetic parameters (HWIO weights; shapes from __init__)
# ------------------------------------------------------------------
def init_params(key):
    ks = jax.random.split(key, 6)

    def bn_params(k, c):
        k1, k2, k3, k4 = jax.random.split(k, 4)
        return (1.0 + 0.1 * jax.random.normal(k1, (c,), jnp.float32),   # gamma
                0.1 * jax.random.normal(k2, (c,), jnp.float32),         # beta
                0.1 * jax.random.normal(k3, (c,), jnp.float32),         # running mean
                jnp.abs(jax.random.normal(k4, (c,), jnp.float32)) + 0.5)  # running var

    return dict(
        w1=jax.random.normal(ks[0], (3, 3, 3, 64), jnp.float32) * 0.10,
        bn1=bn_params(ks[1], 64),
        w2=jax.random.normal(ks[2], (3, 3, 64, 64), jnp.float32) * 0.05,
        bn2=bn_params(ks[3], 64),
        w3=jax.random.normal(ks[4], (3, 3, 64, 128), jnp.float32) * 0.05,
        bn3=bn_params(ks[5], 128),
    )


# ------------------------------------------------------------------
# pure-JAX f32 reference for validation
# ------------------------------------------------------------------
def reference_forward(x_nchw, params):
    x = jnp.transpose(x_nchw, (0, 2, 3, 1))

    def block(h, w, bn, stride):
        y = jax.lax.conv_general_dilated(
            h, w, window_strides=(stride, stride),
            padding=((1, 1), (1, 1)),
            dimension_numbers=('NHWC', 'HWIO', 'NHWC'),
            precision=jax.lax.Precision.HIGHEST)
        gamma, beta, mean, var = bn
        scale = gamma / jnp.sqrt(var + 1e-5)
        shift = beta - mean * scale
        return jnp.maximum(y * scale + shift, 0.0)

    h = block(x, params['w1'], params['bn1'], 2)
    h = block(h, params['w2'], params['bn2'], 1)
    h = block(h, params['w3'], params['bn3'], 1)
    h = jax.lax.reduce_window(
        h, -jnp.inf, jax.lax.max,
        window_dimensions=(1, 3, 3, 1),
        window_strides=(1, 2, 2, 1),
        padding=((0, 0), (1, 1), (1, 1), (0, 0)))
    return jnp.transpose(h, (0, 3, 1, 2))


if __name__ == "__main__":
    key = jax.random.PRNGKey(0)
    kx, kp = jax.random.split(key)

    N, CIN, H, W = 2, 3, 16, 16            # module hard-codes in_channels=3
    x = jax.random.normal(kx, (N, CIN, H, W), jnp.float32)
    params = init_params(kp)

    fwd = jax.jit(feature_map_forward)
    out = jax.block_until_ready(fwd(x, params))
    assert out.shape == (N, 128, 4, 4), out.shape

    ref = reference_forward(x, params)
    rel_err = float(jnp.max(jnp.abs(out - ref)) / (jnp.max(jnp.abs(ref)) + 1e-6))
    # bf16 weight/activation streaming across 3 conv layers; f32 accumulation.
    assert rel_err < 3e-2, f"relative error too large: {rel_err}"

    print("KERNEL_OK")
</pallas_src>

<mosaic_0001>
module attributes {stable_mosaic.version = 11 : i64} {
  func.func @_conv_bn_relu_kernel(%arg0: i32, %arg1: memref<128x27xbf16, #tpu.memory_space<vmem>>, %arg2: memref<27x64xbf16, #tpu.memory_space<vmem>>, %arg3: memref<1x64xf32, #tpu.memory_space<vmem>>, %arg4: memref<1x64xf32, #tpu.memory_space<vmem>>, %arg5: memref<128x64xbf16, #tpu.memory_space<vmem>>) attributes {dimension_semantics = [#tpu.dimension_semantics<arbitrary>], iteration_bounds = array<i64: 1>, scalar_prefetch = 0 : i64, scratch_operands = 0 : i64, tpu.core_type = #tpu.core_type<tc>, window_params = [{pipeline_mode = #tpu.pipeline_mode<synchronous>, transform_indices = @transform_0, window_bounds = array<i64: 128, 27>}, {pipeline_mode = #tpu.pipeline_mode<synchronous>, transform_indices = @transform_1, window_bounds = array<i64: 27, 64>}, {pipeline_mode = #tpu.pipeline_mode<synchronous>, transform_indices = @transform_2, window_bounds = array<i64: 1, 64>}, {pipeline_mode = #tpu.pipeline_mode<synchronous>, transform_indices = @transform_3, window_bounds = array<i64: 1, 64>}, {pipeline_mode = #tpu.pipeline_mode<synchronous>, transform_indices = @transform_4, window_bounds = array<i64: 128, 64>}]} {
    %c0 = arith.constant 0 : index
    %c0_0 = arith.constant 0 : index
    %0 = vector.load %arg1[%c0, %c0_0] : memref<128x27xbf16, #tpu.memory_space<vmem>>, vector<128x27xbf16>
    %c0_1 = arith.constant 0 : index
    %c0_2 = arith.constant 0 : index
    %1 = vector.load %arg2[%c0_1, %c0_2] : memref<27x64xbf16, #tpu.memory_space<vmem>>, vector<27x64xbf16>
    %cst = arith.constant dense<0.000000e+00> : vector<128x64xf32>
    %2 = tpu.matmul %0, %1, %cst {dimension_numbers = #tpu.dot_dimension_numbers<[1], [0], [0], [1], [0, 0, 1, 1], [], []>} : vector<128x27xbf16>, vector<27x64xbf16>, vector<128x64xf32> -> vector<128x64xf32>
    %c0_3 = arith.constant 0 : index
    %c0_4 = arith.constant 0 : index
    %3 = vector.load %arg3[%c0_3, %c0_4] : memref<1x64xf32, #tpu.memory_space<vmem>>, vector<1x64xf32>
    %4 = vector.broadcast %3 : vector<1x64xf32> to vector<128x64xf32>
    %5 = arith.mulf %2, %4 : vector<128x64xf32>
    %c0_5 = arith.constant 0 : index
    %c0_6 = arith.constant 0 : index
    %6 = vector.load %arg4[%c0_5, %c0_6] : memref<1x64xf32, #tpu.memory_space<vmem>>, vector<1x64xf32>
    %7 = vector.broadcast %6 : vector<1x64xf32> to vector<128x64xf32>
    %8 = arith.addf %5, %7 : vector<128x64xf32>
    %cst_7 = arith.constant 0.000000e+00 : f32
    %9 = vector.broadcast %cst_7 : f32 to vector<128x64xf32>
    %10 = arith.maximumf %8, %9 : vector<128x64xf32>
    %11 = arith.truncf %10 : vector<128x64xf32> to vector<128x64xbf16>
    %c0_8 = arith.constant 0 : index
    %c0_9 = arith.constant 0 : index
    %12 = vector.load %arg5[%c0_8, %c0_9] : memref<128x64xbf16, #tpu.memory_space<vmem>>, vector<128x64xbf16>
    tpu.vector_store %arg5[%c0_8, %c0_9], %11 {strides = array<i32>} : memref<128x64xbf16, #tpu.memory_space<vmem>>, vector<128x64xbf16>,
    return
  }
  func.func @transform_0(%arg0: i32) -> (i32, i32) {
    %c0_i32 = arith.constant 0 : i32
    %c0_i32_0 = arith.constant 0 : i32
    %c0_i32_1 = arith.constant 0 : i32
    return %c0_i32, %c0_i32_0 : i32, i32
  }
  func.func @transform_1(%arg0: i32) -> (i32, i32) {
    %c0_i32 = arith.constant 0 : i32
    %c0_i32_0 = arith.constant 0 : i32
    %c0_i32_1 = arith.constant 0 : i32
    return %c0_i32, %c0_i32_0 : i32, i32
  }
  func.func @transform_2(%arg0: i32) -> (i32, i32) {
    %c0_i32 = arith.constant 0 : i32
    %c0_i32_0 = arith.constant 0 : i32
    %c0_i32_1 = arith.constant 0 : i32
    return %c0_i32, %c0_i32_0 : i32, i32
  }
  func.func @transform_3(%arg0: i32) -> (i32, i32) {
    %c0_i32 = arith.constant 0 : i32
    %c0_i32_0 = arith.constant 0 : i32
    %c0_i32_1 = arith.constant 0 : i32
    return %c0_i32, %c0_i32_0 : i32, i32
  }
  func.func @transform_4(%arg0: i32) -> (i32, i32) {
    %c0_i32 = arith.constant 0 : i32
    %c0_i32_0 = arith.constant 0 : i32
    %c0_i32_1 = arith.constant 0 : i32
    return %c0_i32, %c0_i32_0 : i32, i32
  }
}

module attributes {stable_mosaic.version = 11 : i64} {
  func.func @kernel(%arg0: i32, %arg1: memref<128x576xbf16, #tpu.memory_space<vmem>>, %arg2: memref<576x128xbf16, #tpu.memory_space<vmem>>, %arg3: memref<1x128xf32, #tpu.memory_space<vmem>>, %arg4: memref<1x128xf32, #tpu.memory_space<vmem>>, %arg5: memref<32x128xf32, #tpu.memory_space<vmem>>) attributes {dimension_semantics = [#tpu.dimension_semantics<arbitrary>], iteration_bounds = array<i64: 1>, scalar_prefetch = 0 : i64, scratch_operands = 0 : i64, tpu.core_type = #tpu.core_type<tc>, window_params = [{pipeline_mode = #tpu.pipeline_mode<synchronous>, transform_indices = @transform_0, window_bounds = array<i64: 128, 576>}, {pipeline_mode = #tpu.pipeline_mode<synchronous>, transform_indices = @transform_1, window_bounds = array<i64: 576, 128>}, {pipeline_mode = #tpu.pipeline_mode<synchronous>, transform_indices = @transform_2, window_bounds = array<i64: 1, 128>}, {pipeline_mode = #tpu.pipeline_mode<synchronous>, transform_indices = @transform_3, window_bounds = array<i64: 1, 128>}, {pipeline_mode = #tpu.pipeline_mode<synchronous>, transform_indices = @transform_4, window_bounds = array<i64: 32, 128>}]} {
    %c0 = arith.constant 0 : index
    %c0_0 = arith.constant 0 : index
    %0 = vector.load %arg1[%c0, %c0_0] : memref<128x576xbf16, #tpu.memory_space<vmem>>, vector<128x576xbf16>
    %c0_1 = arith.constant 0 : index
    %c0_2 = arith.constant 0 : index
    %1 = vector.load %arg2[%c0_1, %c0_2] : memref<576x128xbf16, #tpu.memory_space<vmem>>, vector<576x128xbf16>
    %cst = arith.constant dense<0.000000e+00> : vector<128x128xf32>
    %2 = tpu.matmul %0, %1, %cst {dimension_numbers = #tpu.dot_dimension_numbers<[1], [0], [0], [1], [0, 0, 1, 1], [], []>} : vector<128x576xbf16>, vector<576x128xbf16>, vector<128x128xf32> -> vector<128x128xf32>
    %c0_3 = arith.constant 0 : index
    %c0_4 = arith.constant 0 : index
    %3 = vector.load %arg3[%c0_3, %c0_4] : memref<1x128xf32, #tpu.memory_space<vmem>>, vector<1x128xf32>
    %4 = vector.broadcast %3 : vector<1x128xf32> to vector<128x128xf32>
    %5 = arith.mulf %2, %4 : vector<128x128xf32>
    %c0_5 = arith.constant 0 : index
    %c0_6 = arith.constant 0 : index
    %6 = vector.load %arg4[%c0_5, %c0_6] : memref<1x128xf32, #tpu.memory_space<vmem>>, vector<1x128xf32>
    %7 = vector.broadcast %6 : vector<1x128xf32> to vector<128x128xf32>
    %8 = arith.addf %5, %7 : vector<128x128xf32>
    %cst_7 = arith.constant 0.000000e+00 : f32
    %9 = vector.broadcast %cst_7 : f32 to vector<128x128xf32>
    %10 = arith.maximumf %8, %9 : vector<128x128xf32>
    %11 = vector.extract_strided_slice %10 {offsets = [0, 0], sizes = [8, 128], strides = [1, 1]} : vector<128x128xf32> to vector<8x128xf32>
    %12 = vector.extract_strided_slice %10 {offsets = [8, 0], sizes = [8, 128], strides = [1, 1]} : vector<128x128xf32> to vector<8x128xf32>
    %13 = arith.maximumf %11, %12 : vector<8x128xf32>
    %14 = vector.extract_strided_slice %13 {offsets = [0, 0], sizes = [1, 128], strides = [1, 1]} : vector<8x128xf32> to vector<1x128xf32>
    %15 = vector.extract_strided_slice %13 {offsets = [1, 0], sizes = [1, 128], strides = [1, 1]} : vector<8x128xf32> to vector<1x128xf32>
    %16 = arith.maximumf %14, %15 : vector<1x128xf32>
    %c0_8 = arith.constant 0 : index
    %c0_9 = arith.constant 0 : index
    %17 = vector.load %arg5[%c0_8, %c0_9] : memref<32x128xf32, #tpu.memory_space<vmem>>, vector<1x128xf32>
    tpu.vector_store %arg5[%c0_8, %c0_9], %16 {strides = array<i32>} : memref<32x128xf32, #tpu.memory_space<vmem>>, vector<1x128xf32>,
    %18 = vector.extract_strided_slice %13 {offsets = [1, 0], sizes = [1, 128], strides = [1, 1]} : vector<8x128xf32> to vector<1x128xf32>
    %19 = vector.extract_strided_slice %13 {offsets = [2, 0], sizes = [1, 128], strides = [1, 1]} : vector<8x128xf32> to vector<1x128xf32>
    %20 = arith.maximumf %18, %19 : vector<1x128xf32>
    %21 = vector.extract_strided_slice %13 {offsets = [3, 0], sizes = [1, 128], strides = [1, 1]} : vector<8x128xf32> to vector<1x128xf32>
    %22 = arith.maximumf %20, %21 : vector<1x128xf32>
    %c1 = arith.constant 1 : index
    %c0_10 = arith.constant 0 : index
    %23 = vector.load %arg5[%c1, %c0_10] : memref<32x128xf32, #tpu.memory_space<vmem>>, vector<1x128xf32>
    tpu.vector_store %arg5[%c1, %c0_10], %22 {strides = array<i32>} : memref<32x128xf32, #tpu.memory_space<vmem>>, vector<1x128xf32>,
    %24 = vector.extract_strided_slice %13 {offsets = [3, 0], sizes = [1, 128], strides = [1, 1]} : vector<8x128xf32> to vector<1x128xf32>
    %25 = vector.extract_strided_slice %13 {offsets = [4, 0], sizes = [1, 128], strides = [1, 1]} : vector<8x128xf32> to vector<1x128xf32>
    %26 = arith.maximumf %24, %25 : vector<1x128xf32>
    %27 = vector.extract_strided_slice %13 {offsets = [5, 0], sizes = [1, 128], strides = [1, 1]} : vector<8x128xf32> to vector<1x128xf32>
    %28 = arith.maximumf %26, %27 : vector<1x128xf32>
    %c2 = arith.constant 2 : index
    %c0_11 = arith.constant 0 : index
    %29 = vector.load %arg5[%c2, %c0_11] : memref<32x128xf32, #tpu.memory_space<vmem>>, vector<1x128xf32>
    tpu.vector_store %arg5[%c2, %c0_11], %28 {strides = array<i32>} : memref<32x128xf32, #tpu.memory_space<vmem>>, vector<1x128xf32>,
    %30 = vector.extract_strided_slice %13 {offsets = [5, 0], sizes = [1, 128], strides = [1, 1]} : vector<8x128xf32> to vector<1x128xf32>
    %31 = vector.extract_strided_slice %13 {offsets = [6, 0], sizes = [1, 128], strides = [1, 1]} : vector<8x128xf32> to vector<1x128xf32>
    %32 = arith.maximumf %30, %31 : vector<1x128xf32>
    %33 = vector.extract_strided_slice %13 {offsets = [7, 0], sizes = [1, 128], strides = [1, 1]} : vector<8x128xf32> to vector<1x128xf32>
    %34 = arith.maximumf %32, %33 : vector<1x128xf32>
    %c3 = arith.constant 3 : index
    %c0_12 = arith.constant 0 : index
    %35 = vector.load %arg5[%c3, %c0_12] : memref<32x128xf32, #tpu.memory_space<vmem>>, vector<1x128xf32>
    tpu.vector_store %arg5[%c3, %c0_12], %34 {strides = array<i32>} : memref<32x128xf32, #tpu.memory_space<vmem>>, vector<1x128xf32>,
    %36 = vector.extract_strided_slice %10 {offsets = [8, 0], sizes = [8, 128], strides = [1, 1]} : vector<128x128xf32> to vector<8x128xf32>
    %37 = vector.extract_strided_slice %10 {offsets = [16, 0], sizes = [8, 128], strides = [1, 1]} : vector<128x128xf32> to vector<8x128xf32>
    %38 = arith.maximumf %36, %37 : vector<8x128xf32>
    %39 = vector.extract_strided_slice %10 {offsets = [24, 0], sizes = [8, 128], strides = [1, 1]} : vector<128x128xf32> to vector<8x128xf32>
    %40 = arith.maximumf %38, %39 : vector<8x128xf32>
    %41 = vector.extract_strided_slice %40 {offsets = [0, 0], sizes = [1, 128], strides = [1, 1]} : vector<8x128xf32> to vector<1x128xf32>
    %42 = vector.extract_strided_slice %40 {offsets = [1, 0], sizes = [1, 128], strides = [1, 1]} : vector<8x128xf32> to vector<1x128xf32>
    %43 = arith.maximumf %41, %42 : vector<1x128xf32>
    %c4 = arith.constant 4 : index
    %c0_13 = arith.constant 0 : index
    %44 = vector.load %arg5[%c4, %c0_13] : memref<32x128xf32, #tpu.memory_space<vmem>>, vector<1x128xf32>
    tpu.vector_store %arg5[%c4, %c0_13], %43 {strides = array<i32>} : memref<32x128xf32, #tpu.memory_space<vmem>>, vector<1x128xf32>,
    %45 = vector.extract_strided_slice %40 {offsets = [1, 0], sizes = [1, 128], strides = [1, 1]} : vector<8x128xf32> to vector<1x128xf32>
    %46 = vector.extract_strided_slice %40 {offsets = [2, 0], sizes = [1, 128], strides = [1, 1]} : vector<8x128xf32> to vector<1x128xf32>
    %47 = arith.maximumf %45, %46 : vector<1x128xf32>
    %48 = vector.extract_strided_slice %40 {offsets = [3, 0], sizes = [1, 128], strides = [1, 1]} : vector<8x128xf32> to vector<1x128xf32>
    %49 = arith.maximumf %47, %48 : vector<1x128xf32>
    %c5 = arith.constant 5 : index
    %c0_14 = arith.constant 0 : index
    %50 = vector.load %arg5[%c5, %c0_14] : memref<32x128xf32, #tpu.memory_space<vmem>>, vector<1x128xf32>
    tpu.vector_store %arg5[%c5, %c0_14], %49 {strides = array<i32>} : memref<32x128xf32, #tpu.memory_space<vmem>>, vector<1x128xf32>,
    %51 = vector.extract_strided_slice %40 {offsets = [3, 0], sizes = [1, 128], strides = [1, 1]} : vector<8x128xf32> to vector<1x128xf32>
    %52 = vector.extract_strided_slice %40 {offsets = [4, 0], sizes = [1, 128], strides = [1, 1]} : vector<8x128xf32> to vector<1x128xf32>
    %53 = arith.maximumf %51, %52 : vector<1x128xf32>
    %54 = vector.extract_strided_slice %40 {offsets = [5, 0], sizes = [1, 128], strides = [1, 1]} : vector<8x128xf32> to vector<1x128xf32>
    %55 = arith.maximumf %53, %54 : vector<1x128xf32>
    %c6 = arith.constant 6 : index
    %c0_15 = arith.constant 0 : index
    %56 = vector.load %arg5[%c6, %c0_15] : memref<32x128xf32, #tpu.memory_space<vmem>>, vector<1x128xf32>
    tpu.vector_store %arg5[%c6, %c0_15], %55 {strides = array<i32>} : memref<32x128xf32, #tpu.memory_space<vmem>>, vector<1x128xf32>,
    %57 = vector.extract_strided_slice %40 {offsets = [5, 0], sizes = [1, 128], strides = [1, 1]} : vector<8x128xf32> to vector<1x128xf32>
    %58 = vector.extract_strided_slice %40 {offsets = [6, 0], sizes = [1, 128], strides = [1, 1]} : vector<8x128xf32> to vector<1x128xf32>
    %59 = arith.maximumf %57, %58 : vector<1x128xf32>
    %60 = vector.extract_strided_slice %40 {offsets = [7, 0], sizes = [1, 128], strides = [1, 1]} : vector<8x128xf32> to vector<1x128xf32>
    %61 = arith.maximumf %59, %60 : vector<1x128xf32>
    %c7 = arith.constant 7 : index
    %c0_16 = arith.constant 0 : index
    %62 = vector.load %arg5[%c7, %c0_16] : memref<32x128xf32, #tpu.memory_space<vmem>>, vector<1x128xf32>
    tpu.vector_store %arg5[%c7, %c0_16], %61 {strides = array<i32>} : memref<32x128xf32, #tpu.memory_space<vmem>>, vector<1x128xf32>,
    %63 = vector.extract_strided_slice %10 {offsets = [24, 0], sizes = [8, 128], strides = [1, 1]} : vector<128x128xf32> to vector<8x128xf32>
    %64 = vector.extract_strided_slice %10 {offsets = [32, 0], sizes = [8, 128], strides = [1, 1]} : vector<128x128xf32> to vector<8x128xf32>
    %65 = arith.maximumf %63, %64 : vector<8x128xf32>
    %66 = vector.extract_strided_slice %10 {offsets = [40, 0], sizes = [8, 128], strides = [1, 1]} : vector<128x128xf32> to vector<8x128xf32>
    %67 = arith.maximumf %65, %66 : vector<8x128xf32>
    %68 = vector.extract_strided_slice %67 {offsets = [0, 0], sizes = [1, 128], strides = [1, 1]} : vector<8x128xf32> to vector<1x128xf32>
    %69 = vector.extract_strided_slice %67 {offsets = [1, 0], sizes = [1, 128], strides = [1, 1]} : vector<8x128xf32> to vector<1x128xf32>
    %70 = arith.maximumf %68, %69 : vector<1x128xf32>
    %c8 = arith.constant 8 : index
    %c0_17 = arith.constant 0 : index
    %71 = vector.load %arg5[%c8, %c0_17] : memref<32x128xf32, #tpu.memory_space<vmem>>, vector<1x128xf32>
    tpu.vector_store %arg5[%c8, %c0_17], %70 {strides = array<i32>} : memref<32x128xf32, #tpu.memory_space<vmem>>, vector<1x128xf32>,
    %72 = vector.extract_strided_slice %67 {offsets = [1, 0], sizes = [1, 128], strides = [1, 1]} : vector<8x128xf32> to vector<1x128xf32>
    %73 = vector.extract_strided_slice %67 {offsets = [2, 0], sizes = [1, 128], strides = [1, 1]} : vector<8x128xf32> to vector<1x128xf32>
    %74 = arith.maximumf %72, %73 : vector<1x128xf32>
    %75 = vector.extract_strided_slice %67 {offsets = [3, 0], sizes = [1, 128], strides = [1, 1]} : vector<8x128xf32> to vector<1x128xf32>
    %76 = arith.maximumf %74, %75 : vector<1x128xf32>
    %c9 = arith.constant 9 : index
    %c0_18 = arith.constant 0 : index
    %77 = vector.load %arg5[%c9, %c0_18] : memref<32x128xf32, #tpu.memory_space<vmem>>, vector<1x128xf32>
    tpu.vector_store %arg5[%c9, %c0_18], %76 {strides = array<i32>} : memref<32x128xf32, #tpu.memory_space<vmem>>, vector<1x128xf32>,
    %78 = vector.extract_strided_slice %67 {offsets = [3, 0], sizes = [1, 128], strides = [1, 1]} : vector<8x128xf32> to vector<1x128xf32>
    %79 = vector.extract_strided_slice %67 {offsets = [4, 0], sizes = [1, 128], strides = [1, 1]} : vector<8x128xf32> to vector<1x128xf32>
    %80 = arith.maximumf %78, %79 : vector<1x128xf32>
    %81 = vector.extract_strided_slice %67 {offsets = [5, 0], sizes = [1, 128], strides = [1, 1]} : vector<8x128xf32> to vector<1x128xf32>
    %82 = arith.maximumf %80, %81 : vector<1x128xf32>
    %c10 = arith.constant 10 : index
    %c0_19 = arith.constant 0 : index
    %83 = vector.load %arg5[%c10, %c0_19] : memref<32x128xf32, #tpu.memory_space<vmem>>, vector<1x128xf32>
    tpu.vector_store %arg5[%c10, %c0_19], %82 {strides = array<i32>} : memref<32x128xf32, #tpu.memory_space<vmem>>, vector<1x128xf32>,
    %84 = vector.extract_strided_slice %67 {offsets = [5, 0], sizes = [1, 128], strides = [1, 1]} : vector<8x128xf32> to vector<1x128xf32>
    %85 = vector.extract_strided_slice %67 {offsets = [6, 0], sizes = [1, 128], strides = [1, 1]} : vector<8x128xf32> to vector<1x128xf32>
    %86 = arith.maximumf %84, %85 : vector<1x128xf32>
    %87 = vector.extract_strided_slice %67 {offsets = [7, 0], sizes = [1, 128], strides = [1, 1]} : vector<8x128xf32> to vector<1x128xf32>
    %88 = arith.maximumf %86, %87 : vector<1x128xf32>
    %c11 = arith.constant 11 : index
    %c0_20 = arith.constant 0 : index
    %89 = vector.load %arg5[%c11, %c0_20] : memref<32x128xf32, #tpu.memory_space<vmem>>, vector<1x128xf32>
    tpu.vector_store %arg5[%c11, %c0_20], %88 {strides = array<i32>} : memref<32x128xf32, #tpu.memory_space<vmem>>, vector<1x128xf32>,
    %90 = vector.extract_strided_slice %10 {offsets = [40, 0], sizes = [8, 128], strides = [1, 1]} : vector<128x128xf32> to vector<8x128xf32>
    %91 = vector.extract_strided_slice %10 {offsets = [48, 0], sizes = [8, 128], strides = [1, 1]} : vector<128x128xf32> to vector<8x128xf32>
    %92 = arith.maximumf %90, %91 : vector<8x128xf32>
    %93 = vector.extract_strided_slice %10 {offsets = [56, 0], sizes = [8, 128], strides = [1, 1]} : vector<128x128xf32> to vector<8x128xf32>
    %94 = arith.maximumf %92, %93 : vector<8x128xf32>
    %95 = vector.extract_strided_slice %94 {offsets = [0, 0], sizes = [1, 128], strides = [1, 1]} : vector<8x128xf32> to vector<1x128xf32>
    %96 = vector.extract_strided_slice %94 {offsets = [1, 0], sizes = [1, 128], strides = [1, 1]} : vector<8x128xf32> to vector<1x128xf32>
    %97 = arith.maximumf %95, %96 : vector<1x128xf32>
    %c12 = arith.constant 12 : index
    %c0_21 = arith.constant 0 : index
    %98 = vector.load %arg5[%c12, %c0_21] : memref<32x128xf32, #tpu.memory_space<vmem>>, vector<1x128xf32>
    tpu.vector_store %arg5[%c12, %c0_21], %97 {strides = array<i32>} : memref<32x128xf32, #tpu.memory_space<vmem>>, vector<1x128xf32>,
    %99 = vector.extract_strided_slice %94 {offsets = [1, 0], sizes = [1, 128], strides = [1, 1]} : vector<8x128xf32> to vector<1x128xf32>
    %100 = vector.extract_strided_slice %94 {offsets = [2, 0], sizes = [1, 128], strides = [1, 1]} : vector<8x128xf32> to vector<1x128xf32>
    %101 = arith.maximumf %99, %100 : vector<1x128xf32>
    %102 = vector.extract_strided_slice %94 {offsets = [3, 0], sizes = [1, 128], strides = [1, 1]} : vector<8x128xf32> to vector<1x128xf32>
    %103 = arith.maximumf %101, %102 : vector<1x128xf32>
    %c13 = arith.constant 13 : index
    %c0_22 = arith.constant 0 : index
    %104 = vector.load %arg5[%c13, %c0_22] : memref<32x128xf32, #tpu.memory_space<vmem>>, vector<1x128xf32>
    tpu.vector_store %arg5[%c13, %c0_22], %103 {strides = array<i32>} : memref<32x128xf32, #tpu.memory_space<vmem>>, vector<1x128xf32>,
    %105 = vector.extract_strided_slice %94 {offsets = [3, 0], sizes = [1, 128], strides = [1, 1]} : vector<8x128xf32> to vector<1x128xf32>
    %106 = vector.extract_strided_slice %94 {offsets = [4, 0], sizes = [1, 128], strides = [1, 1]} : vector<8x128xf32> to vector<1x128xf32>
    %107 = arith.maximumf %105, %106 : vector<1x128xf32>
    %108 = vector.extract_strided_slice %94 {offsets = [5, 0], sizes = [1, 128], strides = [1, 1]} : vector<8x128xf32> to vector<1x128xf32>
    %109 = arith.maximumf %107, %108 : vector<1x128xf32>
    %c14 = arith.constant 14 : index
    %c0_23 = arith.constant 0 : index
    %110 = vector.load %arg5[%c14, %c0_23] : memref<32x128xf32, #tpu.memory_space<vmem>>, vector<1x128xf32>
    tpu.vector_store %arg5[%c14, %c0_23], %109 {strides = array<i32>} : memref<32x128xf32, #tpu.memory_space<vmem>>, vector<1x128xf32>,
    %111 = vector.extract_strided_slice %94 {offsets = [5, 0], sizes = [1, 128], strides = [1, 1]} : vector<8x128xf32> to vector<1x128xf32>
    %112 = vector.extract_strided_slice %94 {offsets = [6, 0], sizes = [1, 128], strides = [1, 1]} : vector<8x128xf32> to vector<1x128xf32>
    %113 = arith.maximumf %111, %112 : vector<1x128xf32>
    %114 = vector.extract_strided_slice %94 {offsets = [7, 0], sizes = [1, 128], strides = [1, 1]} : vector<8x128xf32> to vector<1x128xf32>
    %115 = arith.maximumf %113, %114 : vector<1x128xf32>
    %c15 = arith.constant 15 : index
    %c0_24 = arith.constant 0 : index
    %116 = vector.load %arg5[%c15, %c0_24] : memref<32x128xf32, #tpu.memory_space<vmem>>, vector<1x128xf32>
    tpu.vector_store %arg5[%c15, %c0_24], %115 {strides = array<i32>} : memref<32x128xf32, #tpu.memory_space<vmem>>, vector<1x128xf32>,
    %117 = vector.extract_strided_slice %10 {offsets = [64, 0], sizes = [8, 128], strides = [1, 1]} : vector<128x128xf32> to vector<8x128xf32>
    %118 = vector.extract_strided_slice %10 {offsets = [72, 0], sizes = [8, 128], strides = [1, 1]} : vector<128x128xf32> to vector<8x128xf32>
    %119 = arith.maximumf %117, %118 : vector<8x128xf32>
    %120 = vector.extract_strided_slice %119 {offsets = [0, 0], sizes = [1, 128], strides = [1, 1]} : vector<8x128xf32> to vector<1x128xf32>
    %121 = vector.extract_strided_slice %119 {offsets = [1, 0], sizes = [1, 128], strides = [1, 1]} : vector<8x128xf32> to vector<1x128xf32>
    %122 = arith.maximumf %120, %121 : vector<1x128xf32>
    %c16 = arith.constant 16 : index
    %c0_25 = arith.constant 0 : index
    %123 = vector.load %arg5[%c16, %c0_25] : memref<32x128xf32, #tpu.memory_space<vmem>>, vector<1x128xf32>
    tpu.vector_store %arg5[%c16, %c0_25], %122 {strides = array<i32>} : memref<32x128xf32, #tpu.memory_space<vmem>>, vector<1x128xf32>,
    %124 = vector.extract_strided_slice %119 {offsets = [1, 0], sizes = [1, 128], strides = [1, 1]} : vector<8x128xf32> to vector<1x128xf32>
    %125 = vector.extract_strided_slice %119 {offsets = [2, 0], sizes = [1, 128], strides = [1, 1]} : vector<8x128xf32> to vector<1x128xf32>
    %126 = arith.maximumf %124, %125 : vector<1x128xf32>
    %127 = vector.extract_strided_slice %119 {offsets = [3, 0], sizes = [1, 128], strides = [1, 1]} : vector<8x128xf32> to vector<1x128xf32>
    %128 = arith.maximumf %126, %127 : vector<1x128xf32>
    %c17 = arith.constant 17 : index
    %c0_26 = arith.constant 0 : index
    %129 = vector.load %arg5[%c17, %c0_26] : memref<32x128xf32, #tpu.memory_space<vmem>>, vector<1x128xf32>
    tpu.vector_store %arg5[%c17, %c0_26], %128 {strides = array<i32>} : memref<32x128xf32, #tpu.memory_space<vmem>>, vector<1x128xf32>,
    %130 = vector.extract_strided_slice %119 {offsets = [3, 0], sizes = [1, 128], strides = [1, 1]} : vector<8x128xf32> to vector<1x128xf32>
    %131 = vector.extract_strided_slice %119 {offsets = [4, 0], sizes = [1, 128], strides = [1, 1]} : vector<8x128xf32> to vector<1x128xf32>
    %132 = arith.maximumf %130, %131 : vector<1x128xf32>
    %133 = vector.extract_strided_slice %119 {offsets = [5, 0], sizes = [1, 128], strides = [1, 1]} : vector<8x128xf32> to vector<1x128xf32>
    %134 = arith.maximumf %132, %133 : vector<1x128xf32>
    %c18 = arith.constant 18 : index
    %c0_27 = arith.constant 0 : index
    %135 = vector.load %arg5[%c18, %c0_27] : memref<32x128xf32, #tpu.memory_space<vmem>>, vector<1x128xf32>
    tpu.vector_store %arg5[%c18, %c0_27], %134 {strides = array<i32>} : memref<32x128xf32, #tpu.memory_space<vmem>>, vector<1x128xf32>,
    %136 = vector.extract_strided_slice %119 {offsets = [5, 0], sizes = [1, 128], strides = [1, 1]} : vector<8x128xf32> to vector<1x128xf32>
    %137 = vector.extract_strided_slice %119 {offsets = [6, 0], sizes = [1, 128], strides = [1, 1]} : vector<8x128xf32> to vector<1x128xf32>
    %138 = arith.maximumf %136, %137 : vector<1x128xf32>
    %139 = vector.extract_strided_slice %119 {offsets = [7, 0], sizes = [1, 128], strides = [1, 1]} : vector<8x128xf32> to vector<1x128xf32>
    %140 = arith.maximumf %138, %139 : vector<1x128xf32>
    %c19 = arith.constant 19 : index
    %c0_28 = arith.constant 0 : index
    %141 = vector.load %arg5[%c19, %c0_28] : memref<32x128xf32, #tpu.memory_space<vmem>>, vector<1x128xf32>
    tpu.vector_store %arg5[%c19, %c0_28], %140 {strides = array<i32>} : memref<32x128xf32, #tpu.memory_space<vmem>>, vector<1x128xf32>,
    %142 = vector.extract_strided_slice %10 {offsets = [72, 0], sizes = [8, 128], strides = [1, 1]} : vector<128x128xf32> to vector<8x128xf32>
    %143 = vector.extract_strided_slice %10 {offsets = [80, 0], sizes = [8, 128], strides = [1, 1]} : vector<128x128xf32> to vector<8x128xf32>
    %144 = arith.maximumf %142, %143 : vector<8x128xf32>
    %145 = vector.extract_strided_slice %10 {offsets = [88, 0], sizes = [8, 128], strides = [1, 1]} : vector<128x128xf32> to vector<8x128xf32>
    %146 = arith.maximumf %144, %145 : vector<8x128xf32>
    %147 = vector.extract_strided_slice %146 {offsets = [0, 0], sizes = [1, 128], strides = [1, 1]} : vector<8x128xf32> to vector<1x128xf32>
    %148 = vector.extract_strided_slice %146 {offsets = [1, 0], sizes = [1, 128], strides = [1, 1]} : vector<8x128xf32> to vector<1x128xf32>
    %149 = arith.maximumf %147, %148 : vector<1x128xf32>
    %c20 = arith.constant 20 : index
    %c0_29 = arith.constant 0 : index
    %150 = vector.load %arg5[%c20, %c0_29] : memref<32x128xf32, #tpu.memory_space<vmem>>, vector<1x128xf32>
    tpu.vector_store %arg5[%c20, %c0_29], %149 {strides = array<i32>} : memref<32x128xf32, #tpu.memory_space<vmem>>, vector<1x128xf32>,
    %151 = vector.extract_strided_slice %146 {offsets = [1, 0], sizes = [1, 128], strides = [1, 1]} : vector<8x128xf32> to vector<1x128xf32>
    %152 = vector.extract_strided_slice %146 {offsets = [2, 0], sizes = [1, 128], strides = [1, 1]} : vector<8x128xf32> to vector<1x128xf32>
    %153 = arith.maximumf %151, %152 : vector<1x128xf32>
    %154 = vector.extract_strided_slice %146 {offsets = [3, 0], sizes = [1, 128], strides = [1, 1]} : vector<8x128xf32> to vector<1x128xf32>
    %155 = arith.maximumf %153, %154 : vector<1x128xf32>
    %c21 = arith.constant 21 : index
    %c0_30 = arith.constant 0 : index
    %156 = vector.load %arg5[%c21, %c0_30] : memref<32x128xf32, #tpu.memory_space<vmem>>, vector<1x128xf32>
    tpu.vector_store %arg5[%c21, %c0_30], %155 {strides = array<i32>} : memref<32x128xf32, #tpu.memory_space<vmem>>, vector<1x128xf32>,
    %157 = vector.extract_strided_slice %146 {offsets = [3, 0], sizes = [1, 128], strides = [1, 1]} : vector<8x128xf32> to vector<1x128xf32>
    %158 = vector.extract_strided_slice %146 {offsets = [4, 0], sizes = [1, 128], strides = [1, 1]} : vector<8x128xf32> to vector<1x128xf32>
    %159 = arith.maximumf %157, %158 : vector<1x128xf32>
    %160 = vector.extract_strided_slice %146 {offsets = [5, 0], sizes = [1, 128], strides = [1, 1]} : vector<8x128xf32> to vector<1x128xf32>
    %161 = arith.maximumf %159, %160 : vector<1x128xf32>
    %c22 = arith.constant 22 : index
    %c0_31 = arith.constant 0 : index
    %162 = vector.load %arg5[%c22, %c0_31] : memref<32x128xf32, #tpu.memory_space<vmem>>, vector<1x128xf32>
    tpu.vector_store %arg5[%c22, %c0_31], %161 {strides = array<i32>} : memref<32x128xf32, #tpu.memory_space<vmem>>, vector<1x128xf32>,
    %163 = vector.extract_strided_slice %146 {offsets = [5, 0], sizes = [1, 128], strides = [1, 1]} : vector<8x128xf32> to vector<1x128xf32>
    %164 = vector.extract_strided_slice %146 {offsets = [6, 0], sizes = [1, 128], strides = [1, 1]} : vector<8x128xf32> to vector<1x128xf32>
    %165 = arith.maximumf %163, %164 : vector<1x128xf32>
    %166 = vector.extract_strided_slice %146 {offsets = [7, 0], sizes = [1, 128], strides = [1, 1]} : vector<8x128xf32> to vector<1x128xf32>
    %167 = arith.maximumf %165, %166 : vector<1x128xf32>
    %c23 = arith.constant 23 : index
    %c0_32 = arith.constant 0 : index
    %168 = vector.load %arg5[%c23, %c0_32] : memref<32x128xf32, #tpu.memory_space<vmem>>, vector<1x128xf32>
    tpu.vector_store %arg5[%c23, %c0_32], %167 {strides = array<i32>} : memref<32x128xf32, #tpu.memory_space<vmem>>, vector<1x128xf32>,
    %169 = vector.extract_strided_slice %10 {offsets = [88, 0], sizes = [8, 128], strides = [1, 1]} : vector<128x128xf32> to vector<8x128xf32>
    %170 = vector.extract_strided_slice %10 {offsets = [96, 0], sizes = [8, 128], strides = [1, 1]} : vector<128x128xf32> to vector<8x128xf32>
    %171 = arith.maximumf %169, %170 : vector<8x128xf32>
    %172 = vector.extract_strided_slice %10 {offsets = [104, 0], sizes = [8, 128], strides = [1, 1]} : vector<128x128xf32> to vector<8x128xf32>
    %173 = arith.maximumf %171, %172 : vector<8x128xf32>
    %174 = vector.extract_strided_slice %173 {offsets = [0, 0], sizes = [1, 128], strides = [1, 1]} : vector<8x128xf32> to vector<1x128xf32>
    %175 = vector.extract_strided_slice %173 {offsets = [1, 0], sizes = [1, 128], strides = [1, 1]} : vector<8x128xf32> to vector<1x128xf32>
    %176 = arith.maximumf %174, %175 : vector<1x128xf32>
    %c24 = arith.constant 24 : index
    %c0_33 = arith.constant 0 : index
    %177 = vector.load %arg5[%c24, %c0_33] : memref<32x128xf32, #tpu.memory_space<vmem>>, vector<1x128xf32>
    tpu.vector_store %arg5[%c24, %c0_33], %176 {strides = array<i32>} : memref<32x128xf32, #tpu.memory_space<vmem>>, vector<1x128xf32>,
    %178 = vector.extract_strided_slice %173 {offsets = [1, 0], sizes = [1, 128], strides = [1, 1]} : vector<8x128xf32> to vector<1x128xf32>
    %179 = vector.extract_strided_slice %173 {offsets = [2, 0], sizes = [1, 128], strides = [1, 1]} : vector<8x128xf32> to vector<1x128xf32>
    %180 = arith.maximumf %178, %179 : vector<1x128xf32>
    %181 = vector.extract_strided_slice %173 {offsets = [3, 0], sizes = [1, 128], strides = [1, 1]} : vector<8x128xf32> to vector<1x128xf32>
    %182 = arith.maximumf %180, %181 : vector<1x128xf32>
    %c25 = arith.constant 25 : index
    %c0_34 = arith.constant 0 : index
    %183 = vector.load %arg5[%c25, %c0_34] : memref<32x128xf32, #tpu.memory_space<vmem>>, vector<1x128xf32>
    tpu.vector_store %arg5[%c25, %c0_34], %182 {strides = array<i32>} : memref<32x128xf32, #tpu.memory_space<vmem>>, vector<1x128xf32>,
    %184 = vector.extract_strided_slice %173 {offsets = [3, 0], sizes = [1, 128], strides = [1, 1]} : vector<8x128xf32> to vector<1x128xf32>
    %185 = vector.extract_strided_slice %173 {offsets = [4, 0], sizes = [1, 128], strides = [1, 1]} : vector<8x128xf32> to vector<1x128xf32>
    %186 = arith.maximumf %184, %185 : vector<1x128xf32>
    %187 = vector.extract_strided_slice %173 {offsets = [5, 0], sizes = [1, 128], strides = [1, 1]} : vector<8x128xf32> to vector<1x128xf32>
    %188 = arith.maximumf %186, %187 : vector<1x128xf32>
    %c26 = arith.constant 26 : index
    %c0_35 = arith.constant 0 : index
    %189 = vector.load %arg5[%c26, %c0_35] : memref<32x128xf32, #tpu.memory_space<vmem>>, vector<1x128xf32>
    tpu.vector_store %arg5[%c26, %c0_35], %188 {strides = array<i32>} : memref<32x128xf32, #tpu.memory_space<vmem>>, vector<1x128xf32>,
    %190 = vector.extract_strided_slice %173 {offsets = [5, 0], sizes = [1, 128], strides = [1, 1]} : vector<8x128xf32> to vector<1x128xf32>
    %191 = vector.extract_strided_slice %173 {offsets = [6, 0], sizes = [1, 128], strides = [1, 1]} : vector<8x128xf32> to vector<1x128xf32>
    %192 = arith.maximumf %190, %191 : vector<1x128xf32>
    %193 = vector.extract_strided_slice %173 {offsets = [7, 0], sizes = [1, 128], strides = [1, 1]} : vector<8x128xf32> to vector<1x128xf32>
    %194 = arith.maximumf %192, %193 : vector<1x128xf32>
    %c27 = arith.constant 27 : index
    %c0_36 = arith.constant 0 : index
    %195 = vector.load %arg5[%c27, %c0_36] : memref<32x128xf32, #tpu.memory_space<vmem>>, vector<1x128xf32>
    tpu.vector_store %arg5[%c27, %c0_36], %194 {strides = array<i32>} : memref<32x128xf32, #tpu.memory_space<vmem>>, vector<1x128xf32>,
    %196 = vector.extract_strided_slice %10 {offsets = [104, 0], sizes = [8, 128], strides = [1, 1]} : vector<128x128xf32> to vector<8x128xf32>
    %197 = vector.extract_strided_slice %10 {offsets = [112, 0], sizes = [8, 128], strides = [1, 1]} : vector<128x128xf32> to vector<8x128xf32>
    %198 = arith.maximumf %196, %197 : vector<8x128xf32>
    %199 = vector.extract_strided_slice %10 {offsets = [120, 0], sizes = [8, 128], strides = [1, 1]} : vector<128x128xf32> to vector<8x128xf32>
    %200 = arith.maximumf %198, %199 : vector<8x128xf32>
    %201 = vector.extract_strided_slice %200 {offsets = [0, 0], sizes = [1, 128], strides = [1, 1]} : vector<8x128xf32> to vector<1x128xf32>
    %202 = vector.extract_strided_slice %200 {offsets = [1, 0], sizes = [1, 128], strides = [1, 1]} : vector<8x128xf32> to vector<1x128xf32>
    %203 = arith.maximumf %201, %202 : vector<1x128xf32>
    %c28 = arith.constant 28 : index
    %c0_37 = arith.constant 0 : index
    %204 = vector.load %arg5[%c28, %c0_37] : memref<32x128xf32, #tpu.memory_space<vmem>>, vector<1x128xf32>
    tpu.vector_store %arg5[%c28, %c0_37], %203 {strides = array<i32>} : memref<32x128xf32, #tpu.memory_space<vmem>>, vector<1x128xf32>,
    %205 = vector.extract_strided_slice %200 {offsets = [1, 0], sizes = [1, 128], strides = [1, 1]} : vector<8x128xf32> to vector<1x128xf32>
    %206 = vector.extract_strided_slice %200 {offsets = [2, 0], sizes = [1, 128], strides = [1, 1]} : vector<8x128xf32> to vector<1x128xf32>
    %207 = arith.maximumf %205, %206 : vector<1x128xf32>
    %208 = vector.extract_strided_slice %200 {offsets = [3, 0], sizes = [1, 128], strides = [1, 1]} : vector<8x128xf32> to vector<1x128xf32>
    %209 = arith.maximumf %207, %208 : vector<1x128xf32>
    %c29 = arith.constant 29 : index
    %c0_38 = arith.constant 0 : index
    %210 = vector.load %arg5[%c29, %c0_38] : memref<32x128xf32, #tpu.memory_space<vmem>>, vector<1x128xf32>
    tpu.vector_store %arg5[%c29, %c0_38], %209 {strides = array<i32>} : memref<32x128xf32, #tpu.memory_space<vmem>>, vector<1x128xf32>,
    %211 = vector.extract_strided_slice %200 {offsets = [3, 0], sizes = [1, 128], strides = [1, 1]} : vector<8x128xf32> to vector<1x128xf32>
    %212 = vector.extract_strided_slice %200 {offsets = [4, 0], sizes = [1, 128], strides = [1, 1]} : vector<8x128xf32> to vector<1x128xf32>
    %213 = arith.maximumf %211, %212 : vector<1x128xf32>
    %214 = vector.extract_strided_slice %200 {offsets = [5, 0], sizes = [1, 128], strides = [1, 1]} : vector<8x128xf32> to vector<1x128xf32>
    %215 = arith.maximumf %213, %214 : vector<1x128xf32>
    %c30 = arith.constant 30 : index
    %c0_39 = arith.constant 0 : index
    %216 = vector.load %arg5[%c30, %c0_39] : memref<32x128xf32, #tpu.memory_space<vmem>>, vector<1x128xf32>
    tpu.vector_store %arg5[%c30, %c0_39], %215 {strides = array<i32>} : memref<32x128xf32, #tpu.memory_space<vmem>>, vector<1x128xf32>,
    %217 = vector.extract_strided_slice %200 {offsets = [5, 0], sizes = [1, 128], strides = [1, 1]} : vector<8x128xf32> to vector<1x128xf32>
    %218 = vector.extract_strided_slice %200 {offsets = [6, 0], sizes = [1, 128], strides = [1, 1]} : vector<8x128xf32> to vector<1x128xf32>
    %219 = arith.maximumf %217, %218 : vector<1x128xf32>
    %220 = vector.extract_strided_slice %200 {offsets = [7, 0], sizes = [1, 128], strides = [1, 1]} : vector<8x128xf32> to vector<1x128xf32>
    %221 = arith.maximumf %219, %220 : vector<1x128xf32>
    %c31 = arith.constant 31 : index
    %c0_40 = arith.constant 0 : index
    %222 = vector.load %arg5[%c31, %c0_40] : memref<32x128xf32, #tpu.memory_space<vmem>>, vector<1x128xf32>
    tpu.vector_store %arg5[%c31, %c0_40], %221 {strides = array<i32>} : memref<32x128xf32, #tpu.memory_space<vmem>>, vector<1x128xf32>,
    return
  }
  func.func @transform_0(%arg0: i32) -> (i32, i32) {
    %c0_i32 = arith.constant 0 : i32
    %c0_i32_0 = arith.constant 0 : i32
    %c0_i32_1 = arith.constant 0 : i32
    return %c0_i32, %c0_i32_0 : i32, i32
  }
  func.func @transform_1(%arg0: i32) -> (i32, i32) {
    %c0_i32 = arith.constant 0 : i32
    %c0_i32_0 = arith.constant 0 : i32
    %c0_i32_1 = arith.constant 0 : i32
    return %c0_i32, %c0_i32_0 : i32, i32
  }
  func.func @transform_2(%arg0: i32) -> (i32, i32) {
    %c0_i32 = arith.constant 0 : i32
    %c0_i32_0 = arith.constant 0 : i32
    %c0_i32_1 = arith.constant 0 : i32
    return %c0_i32, %c0_i32_0 : i32, i32
  }
  func.func @transform_3(%arg0: i32) -> (i32, i32) {
    %c0_i32 = arith.constant 0 : i32
    %c0_i32_0 = arith.constant 0 : i32
    %c0_i32_1 = arith.constant 0 : i32
    return %c0_i32, %c0_i32_0 : i32, i32
  }
  func.func @transform_4(%arg0: i32) -> (i32, i32) {
    %c0_i32 = arith.constant 0 : i32
    %c0_i32_0 = arith.constant 0 : i32
    %c0_i32_1 = arith.constant 0 : i32
    return %c0_i32, %c0_i32_0 : i32, i32
  }
}

module attributes {stable_mosaic.version = 11 : i64} {
  func.func @_conv_bn_relu_kernel(%arg0: i32, %arg1: memref<128x576xbf16, #tpu.memory_space<vmem>>, %arg2: memref<576x64xbf16, #tpu.memory_space<vmem>>, %arg3: memref<1x64xf32, #tpu.memory_space<vmem>>, %arg4: memref<1x64xf32, #tpu.memory_space<vmem>>, %arg5: memref<128x64xbf16, #tpu.memory_space<vmem>>) attributes {dimension_semantics = [#tpu.dimension_semantics<arbitrary>], iteration_bounds = array<i64: 1>, scalar_prefetch = 0 : i64, scratch_operands = 0 : i64, tpu.core_type = #tpu.core_type<tc>, window_params = [{pipeline_mode = #tpu.pipeline_mode<synchronous>, transform_indices = @transform_0, window_bounds = array<i64: 128, 576>}, {pipeline_mode = #tpu.pipeline_mode<synchronous>, transform_indices = @transform_1, window_bounds = array<i64: 576, 64>}, {pipeline_mode = #tpu.pipeline_mode<synchronous>, transform_indices = @transform_2, window_bounds = array<i64: 1, 64>}, {pipeline_mode = #tpu.pipeline_mode<synchronous>, transform_indices = @transform_3, window_bounds = array<i64: 1, 64>}, {pipeline_mode = #tpu.pipeline_mode<synchronous>, transform_indices = @transform_4, window_bounds = array<i64: 128, 64>}]} {
    %c0 = arith.constant 0 : index
    %c0_0 = arith.constant 0 : index
    %0 = vector.load %arg1[%c0, %c0_0] : memref<128x576xbf16, #tpu.memory_space<vmem>>, vector<128x576xbf16>
    %c0_1 = arith.constant 0 : index
    %c0_2 = arith.constant 0 : index
    %1 = vector.load %arg2[%c0_1, %c0_2] : memref<576x64xbf16, #tpu.memory_space<vmem>>, vector<576x64xbf16>
    %cst = arith.constant dense<0.000000e+00> : vector<128x64xf32>
    %2 = tpu.matmul %0, %1, %cst {dimension_numbers = #tpu.dot_dimension_numbers<[1], [0], [0], [1], [0, 0, 1, 1], [], []>} : vector<128x576xbf16>, vector<576x64xbf16>, vector<128x64xf32> -> vector<128x64xf32>
    %c0_3 = arith.constant 0 : index
    %c0_4 = arith.constant 0 : index
    %3 = vector.load %arg3[%c0_3, %c0_4] : memref<1x64xf32, #tpu.memory_space<vmem>>, vector<1x64xf32>
    %4 = vector.broadcast %3 : vector<1x64xf32> to vector<128x64xf32>
    %5 = arith.mulf %2, %4 : vector<128x64xf32>
    %c0_5 = arith.constant 0 : index
    %c0_6 = arith.constant 0 : index
    %6 = vector.load %arg4[%c0_5, %c0_6] : memref<1x64xf32, #tpu.memory_space<vmem>>, vector<1x64xf32>
    %7 = vector.broadcast %6 : vector<1x64xf32> to vector<128x64xf32>
    %8 = arith.addf %5, %7 : vector<128x64xf32>
    %cst_7 = arith.constant 0.000000e+00 : f32
    %9 = vector.broadcast %cst_7 : f32 to vector<128x64xf32>
    %10 = arith.maximumf %8, %9 : vector<128x64xf32>
    %11 = arith.truncf %10 : vector<128x64xf32> to vector<128x64xbf16>
    %c0_8 = arith.constant 0 : index
    %c0_9 = arith.constant 0 : index
    %12 = vector.load %arg5[%c0_8, %c0_9] : memref<128x64xbf16, #tpu.memory_space<vmem>>, vector<128x64xbf16>
    tpu.vector_store %arg5[%c0_8, %c0_9], %11 {strides = array<i32>} : memref<128x64xbf16, #tpu.memory_space<vmem>>, vector<128x64xbf16>,
    return
  }
  func.func @transform_0(%arg0: i32) -> (i32, i32) {
    %c0_i32 = arith.constant 0 : i32
    %c0_i32_0 = arith.constant 0 : i32
    %c0_i32_1 = arith.constant 0 : i32
    return %c0_i32, %c0_i32_0 : i32, i32
  }
  func.func @transform_1(%arg0: i32) -> (i32, i32) {
    %c0_i32 = arith.constant 0 : i32
    %c0_i32_0 = arith.constant 0 : i32
    %c0_i32_1 = arith.constant 0 : i32
    return %c0_i32, %c0_i32_0 : i32, i32
  }
  func.func @transform_2(%arg0: i32) -> (i32, i32) {
    %c0_i32 = arith.constant 0 : i32
    %c0_i32_0 = arith.constant 0 : i32
    %c0_i32_1 = arith.constant 0 : i32
    return %c0_i32, %c0_i32_0 : i32, i32
  }
  func.func @transform_3(%arg0: i32) -> (i32, i32) {
    %c0_i32 = arith.constant 0 : i32
    %c0_i32_0 = arith.constant 0 : i32
    %c0_i32_1 = arith.constant 0 : i32
    return %c0_i32, %c0_i32_0 : i32, i32
  }
  func.func @transform_4(%arg0: i32) -> (i32, i32) {
    %c0_i32 = arith.constant 0 : i32
    %c0_i32_0 = arith.constant 0 : i32
    %c0_i32_1 = arith.constant 0 : i32
    return %c0_i32, %c0_i32_0 : i32, i32
  }
}

</mosaic_0001>

<bundles_post_ra>
// kernel: feature_map_forward.3
= control target key start
LH: loop header
LB: loop body
LE: loop exit
PB: predicated region body
PF: predicated region fallthrough
CT: control target
= control target key end

     0   :  { %vm114_vm0 = vcmask 1044480   ;;  %vm115_vm1 = vcmask 1045504   ;;  %vm89_vm2 = vcmask 220160   ;;  %v462_v1 = vmov 65535   ;;  %s632_s1 = inlined_call_operand.vmem [shape: bf16[27,64], index: 1, kind: input, shape index: {}]   ;;  %s633_s0 = inlined_call_operand.vmem [shape: bf16[128,27], index: 0, kind: input, shape index: {}]   ;;  %s634_s2 = inlined_call_operand.vmem [shape: f32[1,64], index: 2, kind: input, shape index: {}]   ;;  %s635_s3 = inlined_call_operand.vmem [shape: f32[1,64], index: 3, kind: input, shape index: {}]   ;;  %s636_s4 = inlined_call_operand.vmem [shape: bf16[128,64], index: 4, kind: output, shape index: {}]  }
   0x1   :  { %v452_v0 = vld [vmem:[%s632_s1] sm:$0xff]   ;;  %v116_v2 = vsel %vm114_vm0, 4294967295, %v462_v1  ;;  %v453_v3 = vld [vmem:[%s632_s1 + $0x8] sm:$0x3f]   ;;  %v458_v10 = vld [vmem:[%s633_s0 + $0x10] sm:$0xff]   ;;  %vm344_vm3 = vcmask 519168  }
   0x2   :  { %427 = vmatprep.subr.bf16.mxu0 %v452_v0  ;;  %447 = vmatprep.subr.bf16.mxu1 %v452_v0  ;;  %v117_v4 = vsel %vm115_vm1, %v116_v2, 0  ;;  %v454_v5 = vld [vmem:[%s633_s0] sm:$0xff]   ;;  %v456_v8 = vld [vmem:[%s633_s0 + $0x8] sm:$0xff]   ;;  %v459_v11 = vld [vmem:[%s633_s0 + $0x30] sm:$0xff]  }
   0x3   :  { %428 = vmatpush3.bf16.msra.mxu0 %v452_v0  ;;  %449 = vmatpush3.bf16.msra.mxu1 %v452_v0  ;;  %v119_v6 = vand.u32 %v453_v3, %v117_v4  ;;  %v455_v7 = vld [vmem:[%s633_s0 + $0x20] sm:$0xff]   ;;  %v457_v9 = vld [vmem:[%s633_s0 + $0x28] sm:$0xff]   ;;  %v460_v12 = vld [vmem:[%s633_s0 + $0x18] sm:$0xff]  }
   0x4   :  { %431 = vmatprep.mubr.msk.bf16.mxu0 %vm89_vm2, %v454_v5  ;;  %439 = vmatprep.mubr.msk.bf16.mxu1 %vm89_vm2, %v455_v7  ;;  %v461_v13 = vld [vmem:[%s633_s0 + $0x38] sm:$0xff]   ;;  %v529_v14 = vld [vmem:[%s634_s2] ss:$0 sm:$0xff] }
   0x5   :  { %429 = vmatprep.subr.bf16.mxu0 %v119_v6  ;;  %448 = vmatprep.subr.bf16.mxu1 %v119_v6  ;;  %v534_v16 = vld [vmem:[%s635_s3] ss:$0 sm:$0xff] }
   0x7   :  { %430 = vmatpush3.bf16.msra.mxu0 %v119_v6  ;;  %450 = vmatpush3.bf16.msra.mxu1 %v119_v6 }
   0xa   :  { %432 = vmatmul.mubr.msk.bf16.vlgmr.msra.gmra.mrb[0].mxu0 %vm89_vm2, %v456_v8  ;;  %440 = vmatmul.mubr.msk.bf16.vlgmr.msra.gmra.mrb[0].mxu1 %vm89_vm2, %v457_v9 }
   0xb   :  { %435 = vmatprep.mubr.msk.bf16.mxu0 %vm89_vm2, %v458_v10  ;;  %443 = vmatprep.mubr.msk.bf16.mxu1 %vm89_vm2, %v459_v11 }
  0x12   :  { %436 = vmatmul.mubr.msk.bf16.gmra.mrb[4].mxu0 %vm89_vm2, %v460_v12  ;;  %444 = vmatmul.mubr.msk.bf16.gmra.mrb[4].mxu1 %vm89_vm2, %v461_v13 }
  0xdd   :  { %v433_v15 = vpop.f32.mrb[0].mxu0  ;;  %v441_v17 = vpop.f32.mrb[0].mxu1 }
  0xde   :  { %v227_v18 = vmul.f32 %v433_v15, %v529_v14  ;;  %v235_v19 = vmul.f32 %v441_v17, %v529_v14  ;;  %v155_v20 = vpop.f32.mrb[1].mxu0  ;;  %v187_v21 = vpop.f32.mrb[1].mxu1 }
  0xdf   :  { %v225_v22 = vmul.f32 %v529_v14, %v155_v20  ;;  %v233_v23 = vmul.f32 %v529_v14, %v187_v21  ;;  %v434_v24 = vpop.f32.mrb[2].mxu0  ;;  %v442_v25 = vpop.f32.mrb[2].mxu1 }
  0xe0   :  { %v250_v26 = vadd.f32 %v534_v16, %v227_v18  ;;  %v258_v27 = vadd.f32 %v534_v16, %v235_v19  ;;  %v228_v28 = vmul.f32 %v434_v24, %v529_v14  ;;  %v236_v29 = vmul.f32 %v442_v25, %v529_v14  ;;  %v158_v30 = vpop.f32.mrb[3].mxu0  ;;  %v190_v31 = vpop.f32.mrb[3].mxu1 }
  0xe1   :  { %v248_v32 = vadd.f32 %v534_v16, %v225_v22  ;;  %v256_v33 = vadd.f32 %v534_v16, %v233_v23  ;;  %v226_v34 = vmul.f32 %v529_v14, %v158_v30  ;;  %v234_v35 = vmul.f32 %v529_v14, %v190_v31 }
  0xe2   :  { %v266_v36 = vmax.f32 %v250_v26, 0.0  ;;  %v274_v37 = vmax.f32 %v258_v27, 0.0  ;;  %v251_v38 = vadd.f32 %v534_v16, %v228_v28  ;;  %v259_v39 = vadd.f32 %v534_v16, %v236_v29 }
  0xe3   :  { %v264_v40 = vmax.f32 %v248_v32, 0.0  ;;  %v272_v41 = vmax.f32 %v256_v33, 0.0  ;;  %v249_v42 = vadd.f32 %v534_v16, %v226_v34  ;;  %v257_v43 = vadd.f32 %v534_v16, %v234_v35 }
  0xe4   :  { %v403_v44 = vpack.c.bf16 %v266_v36, %v266_v36  ;;  %v411_v45 = vpack.c.bf16 %v274_v37, %v274_v37  ;;  %v267_v46 = vmax.f32 %v251_v38, 0.0  ;;  %v275_v47 = vmax.f32 %v259_v39, 0.0 }
  0xe5   :  { %v401_v48 = vpack.c.bf16 %v264_v40, %v264_v40  ;;  %v409_v49 = vpack.c.bf16 %v272_v41, %v272_v41  ;;  %v265_v50 = vmax.f32 %v249_v42, 0.0  ;;  %v273_v51 = vmax.f32 %v257_v43, 0.0  ;;  %v437_v52 = vpop.f32.mrb[4].mxu0  ;;  %v445_v53 = vpop.f32.mrb[4].mxu1 }
  0xe6   :  { %347 = vst.msk [vmem:[%s636_s4 + $0x8] sm:$0xf] %vm344_vm3, %v403_v44  ;;  %355 = vst.msk [vmem:[%s636_s4 + $0x28] sm:$0xf] %vm344_vm3, %v411_v45  ;;  %v404_v54 = vpack.c.bf16 %v267_v46, %v267_v46  ;;  %v412_v55 = vpack.c.bf16 %v275_v47, %v275_v47  ;;  %v231_v56 = vmul.f32 %v437_v52, %v529_v14  ;;  %v171_v58 = vpop.f32.mrb[5].mxu0  ;;  %v203_v59 = vpop.f32.mrb[5].mxu1 }
  0xe7   :  { %v239_v57 = vmul.f32 %v445_v53, %v529_v14  ;;  %345 = vst.msk [vmem:[%s636_s4] sm:$0xf] %vm344_vm3, %v401_v48  ;;  %353 = vst.msk [vmem:[%s636_s4 + $0x20] sm:$0xf] %vm344_vm3, %v409_v49  ;;  %v402_v60 = vpack.c.bf16 %v265_v50, %v265_v50  ;;  %v410_v61 = vpack.c.bf16 %v273_v51, %v273_v51  ;;  %v438_v0 = vpop.f32.mrb[6].mxu0  ;;  %v446_v1 = vpop.f32.mrb[6].mxu1 }
  0xe8   :  { %v229_v62 = vmul.f32 %v529_v14, %v171_v58  ;;  %v237_v63 = vmul.f32 %v529_v14, %v203_v59  ;;  %348 = vst.msk [vmem:[%s636_s4 + $0xc] sm:$0xf] %vm344_vm3, %v404_v54  ;;  %356 = vst.msk [vmem:[%s636_s4 + $0x2c] sm:$0xf] %vm344_vm3, %v412_v55  ;;  %v254_v2 = vadd.f32 %v534_v16, %v231_v56  ;;  %v174_v6 = vpop.f32.mrb[7].mxu0  ;;  %v206_v7 = vpop.f32.mrb[7].mxu1 }
  0xe9   :  { %v262_v3 = vadd.f32 %v534_v16, %v239_v57  ;;  %v232_v4 = vmul.f32 %v438_v0, %v529_v14  ;;  %v240_v5 = vmul.f32 %v446_v1, %v529_v14  ;;  %346 = vst.msk [vmem:[%s636_s4 + $0x4] sm:$0xf] %vm344_vm3, %v402_v60  ;;  %354 = vst.msk [vmem:[%s636_s4 + $0x24] sm:$0xf] %vm344_vm3, %v410_v61 }
  0xea   :  { %v252_v8 = vadd.f32 %v534_v16, %v229_v62  ;;  %v260_v9 = vadd.f32 %v534_v16, %v237_v63  ;;  %v230_v10 = vmul.f32 %v529_v14, %v174_v6  ;;  %v238_v11 = vmul.f32 %v529_v14, %v206_v7 }
  0xeb   :  { %v270_v12 = vmax.f32 %v254_v2, 0.0  ;;  %v278_v13 = vmax.f32 %v262_v3, 0.0  ;;  %v255_v15 = vadd.f32 %v534_v16, %v232_v4  ;;  %v263_v17 = vadd.f32 %v534_v16, %v240_v5 }
  0xec   :  { %v268_v18 = vmax.f32 %v252_v8, 0.0  ;;  %v276_v19 = vmax.f32 %v260_v9, 0.0  ;;  %v253_v20 = vadd.f32 %v534_v16, %v230_v10  ;;  %v261_v21 = vadd.f32 %v534_v16, %v238_v11 }
  0xed   :  { %v407_v22 = vpack.c.bf16 %v270_v12, %v270_v12  ;;  %v415_v23 = vpack.c.bf16 %v278_v13, %v278_v13  ;;  %v271_v24 = vmax.f32 %v255_v15, 0.0  ;;  %v279_v25 = vmax.f32 %v263_v17, 0.0 }
  0xee   :  { %v405_v26 = vpack.c.bf16 %v268_v18, %v268_v18  ;;  %v413_v27 = vpack.c.bf16 %v276_v19, %v276_v19  ;;  %v269_v28 = vmax.f32 %v253_v20, 0.0  ;;  %v277_v14 = vmax.f32 %v261_v21, 0.0 }
  0xef   :  { %351 = vst.msk [vmem:[%s636_s4 + $0x18] sm:$0xf] %vm344_vm3, %v407_v22  ;;  %359 = vst.msk [vmem:[%s636_s4 + $0x38] sm:$0xf] %vm344_vm3, %v415_v23  ;;  %v408_v29 = vpack.c.bf16 %v271_v24, %v271_v24  ;;  %v416_v16 = vpack.c.bf16 %v279_v25, %v279_v25 }
  0xf0   :  { %349 = vst.msk [vmem:[%s636_s4 + $0x10] sm:$0xf] %vm344_vm3, %v405_v26  ;;  %357 = vst.msk [vmem:[%s636_s4 + $0x30] sm:$0xf] %vm344_vm3, %v413_v27  ;;  %v406_v30 = vpack.c.bf16 %v269_v28, %v269_v28  ;;  %v414_v31 = vpack.c.bf16 %v277_v14, %v277_v14 }
  0xf1   :  { %352 = vst.msk [vmem:[%s636_s4 + $0x1c] sm:$0xf] %vm344_vm3, %v408_v29  ;;  %360 = vst.msk [vmem:[%s636_s4 + $0x3c] sm:$0xf] %vm344_vm3, %v416_v16 }
  0xf2   :  { %350 = vst.msk [vmem:[%s636_s4 + $0x14] sm:$0xf] %vm344_vm3, %v406_v30  ;;  %358 = vst.msk [vmem:[%s636_s4 + $0x34] sm:$0xf] %vm344_vm3, %v414_v31 }

// kernel: feature_map_forward.4
= control target key start
LH: loop header
LB: loop body
LE: loop exit
PB: predicated region body
PF: predicated region fallthrough
CT: control target
= control target key end

     0   :  { %vm554_vm0 = vcmask 523264   ;;  %vm996_vm1 = vcmask 519168   ;;  %s1805_s1 = inlined_call_operand.vmem [shape: bf16[576,64], index: 1, kind: input, shape index: {}]   ;;  %s1806_s0 = inlined_call_operand.vmem [shape: bf16[128,576], index: 0, kind: input, shape index: {}]   ;;  %s1807_s2 = inlined_call_operand.vmem [shape: f32[1,64], index: 2, kind: input, shape index: {}]   ;;  %s1808_s3 = inlined_call_operand.vmem [shape: f32[1,64], index: 3, kind: input, shape index: {}]   ;;  %s1809_s4 = inlined_call_operand.vmem [shape: bf16[128,64], index: 4, kind: output, shape index: {}]  }
   0x1   :  { %v1307_v0 = vld [vmem:[%s1805_s1 + $0x40] sm:$0xff]   ;;  %v1311_v4 = vld [vmem:[%s1805_s1 + $0x48] sm:$0xff]   ;;  %v1315_v8 = vld [vmem:[%s1805_s1 + $0x50] sm:$0xff]  }
   0x2   :  { %v1308_v1 = vld [vmem:[%s1805_s1 + $0xc0] sm:$0xff]   ;;  %1135 = vmatprep.subr.bf16.mxu0 %v1307_v0  ;;  %v1312_v5 = vld [vmem:[%s1805_s1 + $0xc8] sm:$0xff]   ;;  %v1316_v9 = vld [vmem:[%s1805_s1 + $0xd0] sm:$0xff]  }
   0x3   :  { %v1309_v2 = vld [vmem:[%s1805_s1] sm:$0xff]   ;;  %1199 = vmatprep.subr.bf16.mxu1 %v1308_v1  ;;  %v1313_v6 = vld [vmem:[%s1805_s1 + $0x8] sm:$0xff]   ;;  %v1317_v10 = vld [vmem:[%s1805_s1 + $0x10] sm:$0xff]  }
   0x4   :  { %v1310_v3 = vld [vmem:[%s1805_s1 + $0x80] sm:$0xff]   ;;  %1136 = vmatpush3.bf16.msra.mxu0 %v1309_v2  ;;  %v1314_v7 = vld [vmem:[%s1805_s1 + $0x88] sm:$0xff]   ;;  %v1318_v11 = vld [vmem:[%s1805_s1 + $0x90] sm:$0xff]  }
   0x5   :  { %1200 = vmatpush3.bf16.msra.mxu1 %v1310_v3  ;;  %1137 = vmatprep.subr.bf16.mxu0 %v1311_v4  ;;  %v1319_v12 = vld [vmem:[%s1805_s1 + $0x58] sm:$0xff]   ;;  %v1323_v16 = vld [vmem:[%s1805_s1 + $0x60] sm:$0xff]   ;;  %v1327_v20 = vld [vmem:[%s1805_s1 + $0x68] sm:$0xff]  }
   0x6   :  { %1201 = vmatprep.subr.bf16.mxu1 %v1312_v5  ;;  %v1320_v13 = vld [vmem:[%s1805_s1 + $0xd8] sm:$0xff]   ;;  %v1324_v17 = vld [vmem:[%s1805_s1 + $0xe0] sm:$0xff]   ;;  %v1328_v21 = vld [vmem:[%s1805_s1 + $0xe8] sm:$0xff]  }
   0x7   :  { %v1321_v14 = vld [vmem:[%s1805_s1 + $0x18] sm:$0xff]   ;;  %v1325_v18 = vld [vmem:[%s1805_s1 + $0x20] sm:$0xff]   ;;  %v1329_v22 = vld [vmem:[%s1805_s1 + $0x28] sm:$0xff]  }
   0x8   :  { %1138 = vmatpush3.bf16.msra.mxu0 %v1313_v6  ;;  %v1322_v15 = vld [vmem:[%s1805_s1 + $0x98] sm:$0xff]   ;;  %v1326_v19 = vld [vmem:[%s1805_s1 + $0xa0] sm:$0xff]   ;;  %v1330_v23 = vld [vmem:[%s1805_s1 + $0xa8] sm:$0xff]  }
   0x9   :  { %1202 = vmatpush3.bf16.msra.mxu1 %v1314_v7  ;;  %1139 = vmatprep.subr.bf16.mxu0 %v1315_v8  ;;  %v1331_v24 = vld [vmem:[%s1805_s1 + $0x70] sm:$0xff]   ;;  %v1335_v28 = vld [vmem:[%s1805_s1 + $0x78] sm:$0xff]   ;;  %v1344_v35 = vld [vmem:[%s1806_s0 + $0xc] ss:$20 sps:$4 sm:$0xff]  }
   0xa   :  { %1203 = vmatprep.subr.bf16.mxu1 %v1316_v9  ;;  %v1332_v25 = vld [vmem:[%s1805_s1 + $0xf0] sm:$0xff]   ;;  %v1336_v29 = vld [vmem:[%s1805_s1 + $0xf8] sm:$0xff]   ;;  %v1345_v36 = vld [vmem:[%s1805_s1 + $0x100] sm:$0xff]   ;;  %708 = vmatprep.mubr.bf16.mxu1 %v1344_v35 }
   0xb   :  { %v1333_v26 = vld [vmem:[%s1805_s1 + $0x30] sm:$0xff]   ;;  %v1337_v30 = vld [vmem:[%s1805_s1 + $0x38] sm:$0xff]   ;;  %v1346_v37 = vld [vmem:[%s1806_s0 + $0x2c] ss:$20 sps:$4 sm:$0xff]  }
   0xc   :  { %1140 = vmatpush3.bf16.msra.mxu0 %v1317_v10  ;;  %v1334_v27 = vld [vmem:[%s1805_s1 + $0xb0] sm:$0xff]   ;;  %v1338_v31 = vld [vmem:[%s1805_s1 + $0xb8] sm:$0xff]   ;;  %v1358_v42 = vld [vmem:[%s1805_s1 + $0x108] sm:$0xff]  }
   0xd   :  { %1204 = vmatpush3.bf16.msra.mxu1 %v1318_v11  ;;  %1141 = vmatprep.subr.bf16.mxu0 %v1319_v12  ;;  %v1339_v32 = vld [vmem:[%s1806_s0] ss:$20 sps:$4 sm:$0xff]   ;;  %v1341_v33 = vld [vmem:[%s1806_s0 + $0x4] ss:$20 sps:$4 sm:$0xff]   ;;  %v1342_v34 = vld [vmem:[%s1806_s0 + $0x8] ss:$20 sps:$4 sm:$0xff]  }
   0xe   :  { %1205 = vmatprep.subr.bf16.mxu1 %v1320_v13  ;;  %611 = vmatprep.mubr.bf16.mxu0 %v1341_v33  ;;  %v1348_v38 = vld [vmem:[%s1806_s0 + $0x34] ss:$20 sps:$4 sm:$0xff]   ;;  %v1351_v40 = vld [vmem:[%s1806_s0 + $0x30] ss:$20 sps:$4 sm:$0xff]   ;;  %v1357_v45 = vld [vmem:[%s1806_s0 + $0x58] ss:$20 sps:$4 sm:$0xff]  }
   0xf   :  { %v1350_v39 = vld [vmem:[%s1806_s0 + $0x28] ss:$20 sps:$4 sm:$0xff]   ;;  %v1356_v44 = vld [vmem:[%s1806_s0 + $0x50] ss:$20 sps:$4 sm:$0xff]   ;;  %v1363_v50 = vld [vmem:[%s1806_s0 + $0x78] ss:$20 sps:$4 sm:$0xff]  }
  0x10   :  { %1142 = vmatpush3.bf16.msra.mxu0 %v1321_v14  ;;  %v1352_v41 = vld [vmem:[%s1806_s0 + $0x54] ss:$20 sps:$4 sm:$0xff]   ;;  %v1354_v43 = vld [vmem:[%s1806_s0 + $0x5c] ss:$20 sps:$4 sm:$0xff]   ;;  %v1361_v48 = vld [vmem:[%s1806_s0 + $0x84] ss:$20 sps:$4 sm:$0xff]  }
  0x11   :  { %1206 = vmatpush3.bf16.msra.mxu1 %v1322_v15  ;;  %1143 = vmatprep.subr.bf16.mxu0 %v1323_v16  ;;  %v1371_v46 = vld [vmem:[%s1805_s1 + $0x110] sm:$0xff]   ;;  %v1384_v49 = vld [vmem:[%s1805_s1 + $0x118] sm:$0xff]   ;;  %v1367_v53 = vld [vmem:[%s1806_s0 + $0xac] ss:$20 sps:$4 sm:$0xff]  }
  0x12   :  { %1207 = vmatprep.subr.bf16.mxu1 %v1324_v17  ;;  %v1359_v47 = vld [vmem:[%s1806_s0 + $0x7c] ss:$20 sps:$4 sm:$0xff]   ;;  %v1364_v51 = vld [vmem:[%s1806_s0 + $0x80] ss:$20 sps:$4 sm:$0xff]   ;;  %v1365_v52 = vld [vmem:[%s1806_s0 + $0xa4] ss:$20 sps:$4 sm:$0xff]  }
  0x13   :  { %v1369_v54 = vld [vmem:[%s1806_s0 + $0xa0] ss:$20 sps:$4 sm:$0xff]   ;;  %v1370_v55 = vld [vmem:[%s1806_s0 + $0xa8] ss:$20 sps:$4 sm:$0xff]   ;;  %v1377_v59 = vld [vmem:[%s1806_s0 + $0xd0] ss:$20 sps:$4 sm:$0xff]  }
  0x14   :  { %1144 = vmatpush3.bf16.msra.mxu0 %v1325_v18  ;;  %v1372_v56 = vld [vmem:[%s1806_s0 + $0xcc] ss:$20 sps:$4 sm:$0xff]   ;;  %v1374_v57 = vld [vmem:[%s1806_s0 + $0xd4] ss:$20 sps:$4 sm:$0xff]   ;;  %v1380_v61 = vld [vmem:[%s1806_s0 + $0xfc] ss:$20 sps:$4 sm:$0xff]  }
  0x15   :  { %1208 = vmatpush3.bf16.msra.mxu1 %v1326_v19  ;;  %1145 = vmatprep.subr.bf16.mxu0 %v1327_v20  ;;  %v1376_v58 = vld [vmem:[%s1806_s0 + $0xc8] ss:$20 sps:$4 sm:$0xff]   ;;  %v1382_v62 = vld [vmem:[%s1806_s0 + $0xf0] ss:$20 sps:$4 sm:$0xff]   ;;  %v1383_v63 = vld [vmem:[%s1806_s0 + $0xf8] ss:$20 sps:$4 sm:$0xff]  }
  0x16   :  { %1209 = vmatprep.subr.bf16.mxu1 %v1328_v21  ;;  %v1378_v60 = vld [vmem:[%s1806_s0 + $0xf4] ss:$20 sps:$4 sm:$0xff]   ;;  %v1385_v0 = vld [vmem:[%s1806_s0 + $0x11c] ss:$20 sps:$4 sm:$0xff]   ;;  %v1387_v1 = vld [vmem:[%s1806_s0 + $0x124] ss:$20 sps:$4 sm:$0xff]  }
  0x17   :  { %v1389_v2 = vld [vmem:[%s1806_s0 + $0x118] ss:$20 sps:$4 sm:$0xff]   ;;  %v1390_v3 = vld [vmem:[%s1806_s0 + $0x120] ss:$20 sps:$4 sm:$0xff]   ;;  %v1391_v4 = vld [vmem:[%s1806_s0 + $0x10] ss:$20 sps:$4 sm:$0xff]  }
  0x18   :  { %1146 = vmatpush3.bf16.msra.mxu0 %v1329_v22  ;;  %v1392_v5 = vld [vmem:[%s1806_s0 + $0xb0] ss:$20 sps:$4 sm:$0xff]   ;;  %v1393_v6 = vld [vmem:[%s1806_s0 + $0x38] ss:$20 sps:$4 sm:$0xff]   ;;  %v1395_v8 = vld [vmem:[%s1806_s0 + $0x60] ss:$20 sps:$4 sm:$0xff]  }
  0x19   :  { %1210 = vmatpush3.bf16.msra.mxu1 %v1330_v23  ;;  %1147 = vmatprep.subr.bf16.mxu0 %v1331_v24  ;;  %v1394_v7 = vld [vmem:[%s1806_s0 + $0xd8] ss:$20 sps:$4 sm:$0xff]   ;;  %v1396_v9 = vld [vmem:[%s1806_s0 + $0x100] ss:$20 sps:$4 sm:$0xff]   ;;  %v1397_v10 = vld [vmem:[%s1806_s0 + $0x88] ss:$20 sps:$4 sm:$0xff]  }
  0x1a   :  { %1211 = vmatprep.subr.bf16.mxu1 %v1332_v25  ;;  %v1398_v11 = vld [vmem:[%s1806_s0 + $0x128] ss:$20 sps:$4 sm:$0xff]  }
  0x1c   :  { %1148 = vmatpush3.bf16.msra.mxu0 %v1333_v26 }
  0x1d   :  { %1212 = vmatpush3.bf16.msra.mxu1 %v1334_v27  ;;  %1149 = vmatprep.subr.bf16.mxu0 %v1335_v28 }
  0x1e   :  { %1213 = vmatprep.subr.bf16.mxu1 %v1336_v29 }
  0x20   :  { %1150 = vmatpush3.bf16.msra.mxu0 %v1337_v30 }
  0x21   :  { %1214 = vmatpush3.bf16.msra.mxu1 %v1338_v31  ;;  %1275 = vmatprep.subr.bf16.mxu0 %v1345_v36 }
  0x22   :  { %1299 = vmatprep.subr.bf16.mxu1 %v1345_v36 }
  0x23   :  { %612 = vmatmul.mubr.bf16.vlgmr.msra.gmra.mrb[0].mxu0 %v1339_v32 }
  0x24   :  { %709 = vmatmul.mubr.bf16.vlgmr.msra.gmra.mrb[0].mxu1 %v1342_v34  ;;  %1276 = vmatpush3.bf16.msra.mxu0 %v1345_v36 }
  0x25   :  { %1303 = vmatpush3.bf16.msra.mxu1 %v1345_v36  ;;  %619 = vmatprep.mubr.bf16.mxu0 %v1346_v37 }
  0x26   :  { %716 = vmatprep.mubr.bf16.mxu1 %v1348_v38  ;;  %1277 = vmatprep.subr.bf16.mxu0 %v1358_v42 }
  0x27   :  { %1300 = vmatprep.subr.bf16.mxu1 %v1358_v42 }
  0x28   :  { %1278 = vmatpush3.bf16.msra.mxu0 %v1358_v42 }
  0x29   :  { %1304 = vmatpush3.bf16.msra.mxu1 %v1358_v42  ;;  %1279 = vmatprep.subr.bf16.mxu0 %v1371_v46 }
  0x2a   :  { %1301 = vmatprep.subr.bf16.mxu1 %v1371_v46 }
  0x2b   :  { %620 = vmatmul.mubr.bf16.gmra.mrb[4].mxu0 %v1350_v39 }
  0x2c   :  { %717 = vmatmul.mubr.bf16.gmra.mrb[4].mxu1 %v1351_v40  ;;  %627 = vmatprep.mubr.bf16.mxu0 %v1352_v41 }
  0x2d   :  { %724 = vmatprep.mubr.bf16.mxu1 %v1354_v43  ;;  %1280 = vmatpush3.bf16.msra.mxu0 %v1371_v46 }
  0x2e   :  { %1305 = vmatpush3.bf16.msra.mxu1 %v1371_v46  ;;  %1281 = vmatprep.subr.bf16.mxu0 %v1384_v49 }
  0x2f   :  { %1302 = vmatprep.subr.bf16.mxu1 %v1384_v49 }
  0x31   :  { %1282 = vmatpush3.bf16.msra.mxu0 %v1384_v49 }
  0x32   :  { %1306 = vmatpush3.bf16.msra.mxu1 %v1384_v49 }
  0x33   :  { %628 = vmatmul.mubr.bf16.gmra.mrb[8].mxu0 %v1356_v44 }
  0x34   :  { %725 = vmatmul.mubr.bf16.gmra.mrb[8].mxu1 %v1357_v45  ;;  %635 = vmatprep.mubr.bf16.mxu0 %v1359_v47 }
  0x35   :  { %732 = vmatprep.mubr.bf16.mxu1 %v1361_v48 }
  0x3b   :  { %636 = vmatmul.mubr.bf16.gmra.mrb[12].mxu0 %v1363_v50 }
  0x3c   :  { %733 = vmatmul.mubr.bf16.gmra.mrb[12].mxu1 %v1364_v51  ;;  %643 = vmatprep.mubr.bf16.mxu0 %v1365_v52 }
  0x3d   :  { %740 = vmatprep.mubr.bf16.mxu1 %v1367_v53 }
  0x43   :  { %644 = vmatmul.mubr.bf16.gmra.mrb[16].mxu0 %v1369_v54 }
  0x44   :  { %741 = vmatmul.mubr.bf16.gmra.mrb[16].mxu1 %v1370_v55  ;;  %651 = vmatprep.mubr.bf16.mxu0 %v1372_v56 }
  0x45   :  { %748 = vmatprep.mubr.bf16.mxu1 %v1374_v57 }
  0x4b   :  { %652 = vmatmul.mubr.bf16.gmra.mrb[20].mxu0 %v1376_v58 }
  0x4c   :  { %749 = vmatmul.mubr.bf16.gmra.mrb[20].mxu1 %v1377_v59  ;;  %659 = vmatprep.mubr.bf16.mxu0 %v1378_v60 }
  0x4d   :  { %756 = vmatprep.mubr.bf16.mxu1 %v1380_v61 }
  0x53   :  { %660 = vmatmul.mubr.bf16.gmra.mrb[24].mxu0 %v1382_v62 }
  0x54   :  { %757 = vmatmul.mubr.bf16.gmra.mrb[24].mxu1 %v1383_v63  ;;  %667 = vmatprep.mubr.bf16.mxu0 %v1385_v0 }
  0x55   :  { %764 = vmatprep.mubr.bf16.mxu1 %v1387_v1 }
  0x5b   :  { %668 = vmatmul.mubr.bf16.gmra.mrb[28].mxu0 %v1389_v2 }
  0x5c   :  { %765 = vmatmul.mubr.bf16.gmra.mrb[28].mxu1 %v1390_v3  ;;  %1283 = vmatprep.mubr.msk.bf16.mxu0 %vm554_vm0, %v1391_v4 }
  0x5d   :  { %1291 = vmatprep.mubr.msk.bf16.mxu1 %vm554_vm0, %v1392_v5 }
  0x63   :  { %1284 = vmatmul.mubr.msk.bf16.vlgmr.msra.gmra.mrb[32].mxu0 %vm554_vm0, %v1393_v6 }
  0x64   :  { %1292 = vmatmul.mubr.msk.bf16.vlgmr.msra.gmra.mrb[32].mxu1 %vm554_vm0, %v1394_v7  ;;  %1287 = vmatprep.mubr.msk.bf16.mxu0 %vm554_vm0, %v1395_v8 }
  0x65   :  { %1295 = vmatprep.mubr.msk.bf16.mxu1 %vm554_vm0, %v1396_v9 }
  0x6b   :  { %1288 = vmatmul.mubr.msk.bf16.gmra.mrb[36].mxu0 %vm554_vm0, %v1397_v10 }
  0x6c   :  { %1296 = vmatmul.mubr.msk.bf16.gmra.mrb[36].mxu1 %vm554_vm0, %v1398_v11 }
  0xf6   :  { %v1151_v12 = vpop.f32.mrb[0].mxu0 }
  0xf7   :  { %v1215_v13 = vpop.f32.mrb[0].mxu1  ;;  %v1152_v14 = vpop.f32.mrb[1].mxu0 }
  0xf8   :  { %v1153_v15 = vadd.f32 %v1152_v14, %v1151_v12  ;;  %v1216_v16 = vpop.f32.mrb[1].mxu1  ;;  %v1154_v17 = vpop.f32.mrb[2].mxu0 }
  0xf9   :  { %v1217_v18 = vadd.f32 %v1216_v16, %v1215_v13  ;;  %v1218_v19 = vpop.f32.mrb[2].mxu1  ;;  %v1155_v20 = vpop.f32.mrb[3].mxu0 }
  0xfa   :  { %v1156_v21 = vadd.f32 %v1155_v20, %v1154_v17  ;;  %v1219_v22 = vpop.f32.mrb[3].mxu1 }
  0xfb   :  { %v1220_v23 = vadd.f32 %v1219_v22, %v1218_v19  ;;  %v1660_v24 = vadd.f32 %v1217_v18, %v1153_v15 }
  0xfd   :  { %v1662_v25 = vadd.f32 %v1220_v23, %v1156_v21 }
  0xfe   :  { %v1157_v26 = vpop.f32.mrb[4].mxu0 }
  0xff   :  { %v1221_v27 = vpop.f32.mrb[4].mxu1  ;;  %v1158_v28 = vpop.f32.mrb[5].mxu0 }
 0x100   :  { %v1159_v29 = vadd.f32 %v1158_v28, %v1157_v26  ;;  %v1222_v30 = vpop.f32.mrb[5].mxu1  ;;  %v1160_v31 = vpop.f32.mrb[6].mxu0 }
 0x101   :  { %v1223_v32 = vadd.f32 %v1222_v30, %v1221_v27  ;;  %v1224_v33 = vpop.f32.mrb[6].mxu1  ;;  %v1161_v34 = vpop.f32.mrb[7].mxu0 }
 0x102   :  { %v1162_v35 = vadd.f32 %v1161_v34, %v1160_v31  ;;  %v1225_v36 = vpop.f32.mrb[7].mxu1 }
 0x103   :  { %v1226_v37 = vadd.f32 %v1225_v36, %v1224_v33  ;;  %v1664_v38 = vadd.f32 %v1223_v32, %v1159_v29 }
 0x105   :  { %v1666_v39 = vadd.f32 %v1226_v37, %v1162_v35 }
 0x106   :  { %v1163_v40 = vpop.f32.mrb[8].mxu0 }
 0x107   :  { %v1227_v41 = vpop.f32.mrb[8].mxu1  ;;  %v1164_v42 = vpop.f32.mrb[9].mxu0 }
 0x108   :  { %v1165_v43 = vadd.f32 %v1164_v42, %v1163_v40  ;;  %v1228_v44 = vpop.f32.mrb[9].mxu1  ;;  %v1166_v45 = vpop.f32.mrb[10].mxu0 }
 0x109   :  { %v1229_v46 = vadd.f32 %v1228_v44, %v1227_v41  ;;  %v1230_v47 = vpop.f32.mrb[10].mxu1  ;;  %v1167_v48 = vpop.f32.mrb[11].mxu0 }
 0x10a   :  { %v1168_v49 = vadd.f32 %v1167_v48, %v1166_v45  ;;  %v1231_v50 = vpop.f32.mrb[11].mxu1 }
 0x10b   :  { %v1232_v51 = vadd.f32 %v1231_v50, %v1230_v47  ;;  %v1668_v52 = vadd.f32 %v1229_v46, %v1165_v43 }
 0x10d   :  { %v1670_v53 = vadd.f32 %v1232_v51, %v1168_v49 }
 0x10e   :  { %v1169_v54 = vpop.f32.mrb[12].mxu0 }
 0x10f   :  { %v1233_v55 = vpop.f32.mrb[12].mxu1  ;;  %v1170_v56 = vpop.f32.mrb[13].mxu0 }
 0x110   :  { %v1171_v57 = vadd.f32 %v1170_v56, %v1169_v54  ;;  %v1234_v58 = vpop.f32.mrb[13].mxu1  ;;  %v1172_v59 = vpop.f32.mrb[14].mxu0 }
 0x111   :  { %v1235_v60 = vadd.f32 %v1234_v58, %v1233_v55  ;;  %v1236_v61 = vpop.f32.mrb[14].mxu1  ;;  %v1173_v62 = vpop.f32.mrb[15].mxu0 }
 0x112   :  { %v1174_v63 = vadd.f32 %v1173_v62, %v1172_v59  ;;  %v1237_v0 = vpop.f32.mrb[15].mxu1 }
 0x113   :  { %v1238_v1 = vadd.f32 %v1237_v0, %v1236_v61  ;;  %v1672_v2 = vadd.f32 %v1235_v60, %v1171_v57 }
 0x115   :  { %v1674_v3 = vadd.f32 %v1238_v1, %v1174_v63 }
 0x116   :  { %v1175_v4 = vpop.f32.mrb[16].mxu0 }
 0x117   :  { %v1239_v5 = vpop.f32.mrb[16].mxu1  ;;  %v1176_v6 = vpop.f32.mrb[17].mxu0 }
 0x118   :  { %v1177_v7 = vadd.f32 %v1176_v6, %v1175_v4  ;;  %v1240_v8 = vpop.f32.mrb[17].mxu1  ;;  %v1178_v9 = vpop.f32.mrb[18].mxu0 }
 0x119   :  { %v1241_v10 = vadd.f32 %v1240_v8, %v1239_v5  ;;  %v1242_v11 = vpop.f32.mrb[18].mxu1  ;;  %v1179_v12 = vpop.f32.mrb[19].mxu0  ;;  %v1689_v5 = vld [vmem:[%s1807_s2] ss:$0 sm:$0xff] }
 0x11a   :  { %v1180_v13 = vadd.f32 %v1179_v12, %v1178_v9  ;;  %v1243_v14 = vpop.f32.mrb[19].mxu1  ;;  %v1695_v9 = vld [vmem:[%s1808_s3] ss:$0 sm:$0xff] }
 0x11b   :  { %v1244_v15 = vadd.f32 %v1243_v14, %v1242_v11  ;;  %v743_v16 = vadd.f32 %v1241_v10, %v1177_v7 }
 0x11d   :  { %v1676_v17 = vadd.f32 %v1244_v15, %v1180_v13 }
 0x11e   :  { %v1181_v18 = vpop.f32.mrb[20].mxu0 }
 0x11f   :  { %v1245_v19 = vpop.f32.mrb[20].mxu1  ;;  %v1182_v20 = vpop.f32.mrb[21].mxu0 }
 0x120   :  { %v1183_v21 = vadd.f32 %v1182_v20, %v1181_v18  ;;  %v1246_v22 = vpop.f32.mrb[21].mxu1  ;;  %v1184_v23 = vpop.f32.mrb[22].mxu0 }
 0x121   :  { %v1247_v26 = vadd.f32 %v1246_v22, %v1245_v19  ;;  %v1248_v27 = vpop.f32.mrb[22].mxu1  ;;  %v1185_v28 = vpop.f32.mrb[23].mxu0 }
 0x122   :  { %v1186_v29 = vadd.f32 %v1185_v28, %v1184_v23  ;;  %v1249_v30 = vpop.f32.mrb[23].mxu1 }
 0x123   :  { %v1250_v31 = vadd.f32 %v1249_v30, %v1248_v27  ;;  %v751_v32 = vadd.f32 %v1247_v26, %v1183_v21 }
 0x125   :  { %v754_v33 = vadd.f32 %v1250_v31, %v1186_v29 }
 0x126   :  { %v1187_v34 = vpop.f32.mrb[24].mxu0 }
 0x127   :  { %v1251_v35 = vpop.f32.mrb[24].mxu1  ;;  %v1188_v36 = vpop.f32.mrb[25].mxu0 }
 0x128   :  { %v1189_v37 = vadd.f32 %v1188_v36, %v1187_v34  ;;  %v1252_v40 = vpop.f32.mrb[25].mxu1  ;;  %v1190_v41 = vpop.f32.mrb[26].mxu0 }
 0x129   :  { %v1253_v42 = vadd.f32 %v1252_v40, %v1251_v35  ;;  %v1254_v43 = vpop.f32.mrb[26].mxu1  ;;  %v1191_v44 = vpop.f32.mrb[27].mxu0 }
 0x12a   :  { %v1192_v45 = vadd.f32 %v1191_v44, %v1190_v41  ;;  %v1255_v46 = vpop.f32.mrb[27].mxu1 }
 0x12b   :  { %v1256_v47 = vadd.f32 %v1255_v46, %v1254_v43  ;;  %v1678_v48 = vadd.f32 %v1253_v42, %v1189_v37 }
 0x12d   :  { %v1680_v49 = vadd.f32 %v1256_v47, %v1192_v45 }
 0x12e   :  { %v1193_v50 = vpop.f32.mrb[28].mxu0 }
 0x12f   :  { %v1257_v51 = vpop.f32.mrb[28].mxu1  ;;  %v1194_v54 = vpop.f32.mrb[29].mxu0 }
 0x130   :  { %v1195_v55 = vadd.f32 %v1194_v54, %v1193_v50  ;;  %v1258_v56 = vpop.f32.mrb[29].mxu1  ;;  %v1196_v57 = vpop.f32.mrb[30].mxu0 }
 0x131   :  { %v1259_v58 = vadd.f32 %v1258_v56, %v1257_v51  ;;  %v1260_v59 = vpop.f32.mrb[30].mxu1  ;;  %v1197_v60 = vpop.f32.mrb[31].mxu0 }
 0x132   :  { %v1198_v61 = vadd.f32 %v1197_v60, %v1196_v57  ;;  %v1261_v62 = vpop.f32.mrb[31].mxu1 }
 0x133   :  { %v1262_v63 = vadd.f32 %v1261_v62, %v1260_v59  ;;  %v1682_v0 = vadd.f32 %v1259_v58, %v1195_v55 }
 0x135   :  { %v1684_v1 = vadd.f32 %v1262_v63, %v1198_v61 }
 0x136   :  { %v1285_v4 = vpop.f32.mrb[32].mxu0 }
 0x137   :  { %v816_v6 = vadd.f32 %v1285_v4, %v1664_v38  ;;  %v1293_v7 = vpop.f32.mrb[32].mxu1  ;;  %v807_v8 = vpop.f32.mrb[33].mxu0 }
 0x138   :  { %v848_v10 = vadd.f32 %v1293_v7, %v751_v32  ;;  %v808_v11 = vadd.f32 %v807_v8, %v1660_v24  ;;  %v839_v12 = vpop.f32.mrb[33].mxu1  ;;  %v1286_v13 = vpop.f32.mrb[34].mxu0 }
 0x139   :  { %v879_v14 = vmul.f32 %v1689_v5, %v816_v6  ;;  %v840_v15 = vadd.f32 %v839_v12, %v743_v16  ;;  %v819_v18 = vadd.f32 %v1286_v13, %v1666_v39  ;;  %v1294_v19 = vpop.f32.mrb[34].mxu1  ;;  %v810_v38 = vpop.f32.mrb[35].mxu0 }
 0x13a   :  { %v887_v20 = vmul.f32 %v1689_v5, %v848_v10  ;;  %v877_v21 = vmul.f32 %v1689_v5, %v808_v11  ;;  %v851_v22 = vadd.f32 %v1294_v19, %v754_v33  ;;  %v811_v23 = vadd.f32 %v810_v38, %v1662_v25  ;;  %v842_v26 = vpop.f32.mrb[35].mxu1 }
 0x13b   :  { %v902_v24 = vadd.f32 %v1695_v9, %v879_v14  ;;  %v885_v27 = vmul.f32 %v1689_v5, %v840_v15  ;;  %v880_v28 = vmul.f32 %v1689_v5, %v819_v18  ;;  %v843_v16 = vadd.f32 %v842_v26, %v1676_v17 }
 0x13c   :  { %v910_v39 = vadd.f32 %v1695_v9, %v887_v20  ;;  %v900_v29 = vadd.f32 %v1695_v9, %v877_v21  ;;  %v888_v30 = vmul.f32 %v1689_v5, %v851_v22  ;;  %v878_v31 = vmul.f32 %v1689_v5, %v811_v23 }
 0x13d   :  { %v918_v32 = vmax.f32 %v902_v24, 0.0  ;;  %v908_v25 = vadd.f32 %v1695_v9, %v885_v27  ;;  %v903_v33 = vadd.f32 %v1695_v9, %v880_v28  ;;  %v886_v34 = vmul.f32 %v1689_v5, %v843_v16 }
 0x13e   :  { %v926_v35 = vmax.f32 %v910_v39, 0.0  ;;  %v916_v36 = vmax.f32 %v900_v29, 0.0  ;;  %v911_v37 = vadd.f32 %v1695_v9, %v888_v30  ;;  %v901_v17 = vadd.f32 %v1695_v9, %v878_v31  ;;  %v1289_v40 = vpop.f32.mrb[36].mxu0 }
 0x13f   :  { %v1121_v41 = vpack.c.bf16 %v918_v32, %v918_v32  ;;  %v924_v42 = vmax.f32 %v908_v25, 0.0  ;;  %v919_v43 = vmax.f32 %v903_v33, 0.0  ;;  %v909_v44 = vadd.f32 %v1695_v9, %v886_v34  ;;  %v1297_v45 = vpop.f32.mrb[36].mxu1  ;;  %v823_v46 = vpop.f32.mrb[37].mxu0 }
 0x140   :  { %v1129_v47 = vpack.c.bf16 %v926_v35, %v926_v35  ;;  %v1119_v50 = vpack.c.bf16 %v916_v36, %v916_v36  ;;  %v927_v51 = vmax.f32 %v911_v37, 0.0  ;;  %v917_v54 = vmax.f32 %v901_v17, 0.0  ;;  %v855_v55 = vpop.f32.mrb[37].mxu1  ;;  %v1290_v56 = vpop.f32.mrb[38].mxu0 }
 0x141   :  { %999 = vst.msk [vmem:[%s1809_s4 + $0x8] sm:$0xf] %vm996_vm1, %v1121_v41  ;;  %v1127_v57 = vpack.c.bf16 %v924_v42, %v924_v42  ;;  %v1122_v58 = vpack.c.bf16 %v919_v43, %v919_v43  ;;  %v925_v59 = vmax.f32 %v909_v44, 0.0  ;;  %v832_v60 = vadd.f32 %v1289_v40, %v1672_v2  ;;  %v1298_v61 = vpop.f32.mrb[38].mxu1  ;;  %v826_v62 = vpop.f32.mrb[39].mxu0 }
 0x142   :  { %1007 = vst.msk [vmem:[%s1809_s4 + $0x28] sm:$0xf] %vm996_vm1, %v1129_v47  ;;  %997 = vst.msk [vmem:[%s1809_s4] sm:$0xf] %vm996_vm1, %v1119_v50  ;;  %v1130_v63 = vpack.c.bf16 %v927_v51, %v927_v51  ;;  %v1120_v4 = vpack.c.bf16 %v917_v54, %v917_v54  ;;  %v864_v6 = vadd.f32 %v1297_v45, %v1682_v0  ;;  %v858_v8 = vpop.f32.mrb[39].mxu1 }
 0x143   :  { %v824_v7 = vadd.f32 %v823_v46, %v1668_v52  ;;  %1005 = vst.msk [vmem:[%s1809_s4 + $0x20] sm:$0xf] %vm996_vm1, %v1127_v57  ;;  %1000 = vst.msk [vmem:[%s1809_s4 + $0xc] sm:$0xf] %vm996_vm1, %v1122_v58  ;;  %v1128_v2 = vpack.c.bf16 %v925_v59, %v925_v59  ;;  %v883_v10 = vmul.f32 %v1689_v5, %v832_v60 }
 0x144   :  { %v856_v11 = vadd.f32 %v855_v55, %v1678_v48  ;;  %v835_v0 = vadd.f32 %v1290_v56, %v1674_v3  ;;  %1008 = vst.msk [vmem:[%s1809_s4 + $0x2c] sm:$0xf] %vm996_vm1, %v1130_v63  ;;  %998 = vst.msk [vmem:[%s1809_s4 + $0x4] sm:$0xf] %vm996_vm1, %v1120_v4  ;;  %v891_v52 = vmul.f32 %v1689_v5, %v864_v6 }
 0x145   :  { %v881_v12 = vmul.f32 %v1689_v5, %v824_v7  ;;  %v867_v13 = vadd.f32 %v1298_v61, %v1684_v1  ;;  %v827_v48 = vadd.f32 %v826_v62, %v1670_v53  ;;  %1006 = vst.msk [vmem:[%s1809_s4 + $0x24] sm:$0xf] %vm996_vm1, %v1128_v2  ;;  %v906_v3 = vadd.f32 %v1695_v9, %v883_v10 }
 0x146   :  { %v889_v14 = vmul.f32 %v1689_v5, %v856_v11  ;;  %v884_v15 = vmul.f32 %v1689_v5, %v835_v0  ;;  %v859_v18 = vadd.f32 %v858_v8, %v1680_v49  ;;  %v914_v19 = vadd.f32 %v1695_v9, %v891_v52 }
 0x147   :  { %v904_v38 = vadd.f32 %v1695_v9, %v881_v12  ;;  %v892_v1 = vmul.f32 %v1689_v5, %v867_v13  ;;  %v882_v53 = vmul.f32 %v1689_v5, %v827_v48  ;;  %v922_v20 = vmax.f32 %v906_v3, 0.0 }
 0x148   :  { %v912_v21 = vadd.f32 %v1695_v9, %v889_v14  ;;  %v907_v22 = vadd.f32 %v1695_v9, %v884_v15  ;;  %v890_v23 = vmul.f32 %v1689_v5, %v859_v18  ;;  %v930_v26 = vmax.f32 %v914_v19, 0.0 }
 0x149   :  { %v920_v24 = vmax.f32 %v904_v38, 0.0  ;;  %v915_v27 = vadd.f32 %v1695_v9, %v892_v1  ;;  %v905_v49 = vadd.f32 %v1695_v9, %v882_v53  ;;  %v1125_v28 = vpack.c.bf16 %v922_v20, %v922_v20 }
 0x14a   :  { %v928_v16 = vmax.f32 %v912_v21, 0.0  ;;  %v923_v39 = vmax.f32 %v907_v22, 0.0  ;;  %v913_v29 = vadd.f32 %v1695_v9, %v890_v23  ;;  %v1133_v30 = vpack.c.bf16 %v930_v26, %v930_v26 }
 0x14b   :  { %v1123_v31 = vpack.c.bf16 %v920_v24, %v920_v24  ;;  %v931_v32 = vmax.f32 %v915_v27, 0.0  ;;  %v921_v25 = vmax.f32 %v905_v49, 0.0  ;;  %1003 = vst.msk [vmem:[%s1809_s4 + $0x18] sm:$0xf] %vm996_vm1, %v1125_v28 }
 0x14c   :  { %v1131_v5 = vpack.c.bf16 %v928_v16, %v928_v16  ;;  %v1126_v33 = vpack.c.bf16 %v923_v39, %v923_v39  ;;  %v929_v34 = vmax.f32 %v913_v29, 0.0  ;;  %1011 = vst.msk [vmem:[%s1809_s4 + $0x38] sm:$0xf] %vm996_vm1, %v1133_v30 }
 0x14d   :  { %1001 = vst.msk [vmem:[%s1809_s4 + $0x10] sm:$0xf] %vm996_vm1, %v1123_v31  ;;  %v1134_v9 = vpack.c.bf16 %v931_v32, %v931_v32  ;;  %v1124_v35 = vpack.c.bf16 %v921_v25, %v921_v25 }
 0x14e   :  { %1009 = vst.msk [vmem:[%s1809_s4 + $0x30] sm:$0xf] %vm996_vm1, %v1131_v5  ;;  %1004 = vst.msk [vmem:[%s1809_s4 + $0x1c] sm:$0xf] %vm996_vm1, %v1126_v33  ;;  %v1132_v36 = vpack.c.bf16 %v929_v34, %v929_v34 }
 0x14f   :  { %1012 = vst.msk [vmem:[%s1809_s4 + $0x3c] sm:$0xf] %vm996_vm1, %v1134_v9  ;;  %1002 = vst.msk [vmem:[%s1809_s4 + $0x14] sm:$0xf] %vm996_vm1, %v1124_v35 }
 0x150   :  { %1010 = vst.msk [vmem:[%s1809_s4 + $0x34] sm:$0xf] %vm996_vm1, %v1132_v36 }

// kernel: feature_map_forward.5
= control target key start
LH: loop header
LB: loop body
LE: loop exit
PB: predicated region body
PF: predicated region fallthrough
CT: control target
= control target key end

     0   :  { %s1795_s0 = inlined_call_operand.vmem [shape: bf16[128,576], index: 0, kind: input, shape index: {}]   ;;  %s1796_s1 = inlined_call_operand.vmem [shape: bf16[576,128], index: 1, kind: input, shape index: {}]   ;;  %s1797_s2 = inlined_call_operand.vmem [shape: f32[1,128], index: 2, kind: input, shape index: {}]   ;;  %s1798_s3 = inlined_call_operand.vmem [shape: f32[1,128], index: 3, kind: input, shape index: {}]   ;;  %s1799_s4 = inlined_call_operand.hbm [shape: f32[32,128], index: 4, kind: output, shape index: {}]  }
   0x1   :  { %v1312_v0 = vld [vmem:[%s1796_s1 + $0x40] sm:$0xff]   ;;  %v1316_v4 = vld [vmem:[%s1796_s1 + $0x48] sm:$0xff]   ;;  %v1320_v8 = vld [vmem:[%s1796_s1 + $0x50] sm:$0xff]  }
   0x2   :  { %v1313_v1 = vld [vmem:[%s1796_s1 + $0xc0] sm:$0xff]   ;;  %1137 = vmatprep.subr.bf16.mxu0 %v1312_v0  ;;  %v1317_v5 = vld [vmem:[%s1796_s1 + $0xc8] sm:$0xff]   ;;  %v1321_v9 = vld [vmem:[%s1796_s1 + $0xd0] sm:$0xff]  }
   0x3   :  { %v1314_v2 = vld [vmem:[%s1796_s1] sm:$0xff]   ;;  %1201 = vmatprep.subr.bf16.mxu1 %v1313_v1  ;;  %v1318_v6 = vld [vmem:[%s1796_s1 + $0x8] sm:$0xff]   ;;  %v1322_v10 = vld [vmem:[%s1796_s1 + $0x10] sm:$0xff]  }
   0x4   :  { %v1315_v3 = vld [vmem:[%s1796_s1 + $0x80] sm:$0xff]   ;;  %1138 = vmatpush3.bf16.msra.mxu0 %v1314_v2  ;;  %v1319_v7 = vld [vmem:[%s1796_s1 + $0x88] sm:$0xff]   ;;  %v1323_v11 = vld [vmem:[%s1796_s1 + $0x90] sm:$0xff]  }
   0x5   :  { %1202 = vmatpush3.bf16.msra.mxu1 %v1315_v3  ;;  %1139 = vmatprep.subr.bf16.mxu0 %v1316_v4  ;;  %v1324_v12 = vld [vmem:[%s1796_s1 + $0x58] sm:$0xff]   ;;  %v1328_v16 = vld [vmem:[%s1796_s1 + $0x60] sm:$0xff]   ;;  %v1332_v20 = vld [vmem:[%s1796_s1 + $0x68] sm:$0xff]  }
   0x6   :  { %1203 = vmatprep.subr.bf16.mxu1 %v1317_v5  ;;  %v1325_v13 = vld [vmem:[%s1796_s1 + $0xd8] sm:$0xff]   ;;  %v1329_v17 = vld [vmem:[%s1796_s1 + $0xe0] sm:$0xff]   ;;  %v1333_v21 = vld [vmem:[%s1796_s1 + $0xe8] sm:$0xff]  }
   0x7   :  { %v1326_v14 = vld [vmem:[%s1796_s1 + $0x18] sm:$0xff]   ;;  %v1330_v18 = vld [vmem:[%s1796_s1 + $0x20] sm:$0xff]   ;;  %v1334_v22 = vld [vmem:[%s1796_s1 + $0x28] sm:$0xff]  }
   0x8   :  { %1140 = vmatpush3.bf16.msra.mxu0 %v1318_v6  ;;  %v1327_v15 = vld [vmem:[%s1796_s1 + $0x98] sm:$0xff]   ;;  %v1331_v19 = vld [vmem:[%s1796_s1 + $0xa0] sm:$0xff]   ;;  %v1335_v23 = vld [vmem:[%s1796_s1 + $0xa8] sm:$0xff]  }
   0x9   :  { %1204 = vmatpush3.bf16.msra.mxu1 %v1319_v7  ;;  %1141 = vmatprep.subr.bf16.mxu0 %v1320_v8  ;;  %v1336_v24 = vld [vmem:[%s1796_s1 + $0x70] sm:$0xff]   ;;  %v1340_v28 = vld [vmem:[%s1796_s1 + $0x78] sm:$0xff]   ;;  %v1349_v35 = vld [vmem:[%s1795_s0 + $0xc] ss:$20 sps:$4 sm:$0xff]  }
   0xa   :  { %1205 = vmatprep.subr.bf16.mxu1 %v1321_v9  ;;  %v1337_v25 = vld [vmem:[%s1796_s1 + $0xf0] sm:$0xff]   ;;  %v1341_v29 = vld [vmem:[%s1796_s1 + $0xf8] sm:$0xff]   ;;  %v1350_v36 = vld [vmem:[%s1796_s1 + $0x100] sm:$0xff]   ;;  %709 = vmatprep.mubr.bf16.mxu1 %v1349_v35 }
   0xb   :  { %v1338_v26 = vld [vmem:[%s1796_s1 + $0x30] sm:$0xff]   ;;  %v1342_v30 = vld [vmem:[%s1796_s1 + $0x38] sm:$0xff]   ;;  %v1351_v37 = vld [vmem:[%s1795_s0 + $0x2c] ss:$20 sps:$4 sm:$0xff]  }
   0xc   :  { %1142 = vmatpush3.bf16.msra.mxu0 %v1322_v10  ;;  %v1339_v27 = vld [vmem:[%s1796_s1 + $0xb0] sm:$0xff]   ;;  %v1343_v31 = vld [vmem:[%s1796_s1 + $0xb8] sm:$0xff]   ;;  %v1363_v42 = vld [vmem:[%s1796_s1 + $0x108] sm:$0xff]  }
   0xd   :  { %1206 = vmatpush3.bf16.msra.mxu1 %v1323_v11  ;;  %1143 = vmatprep.subr.bf16.mxu0 %v1324_v12  ;;  %v1344_v32 = vld [vmem:[%s1795_s0] ss:$20 sps:$4 sm:$0xff]   ;;  %v1346_v33 = vld [vmem:[%s1795_s0 + $0x4] ss:$20 sps:$4 sm:$0xff]   ;;  %v1347_v34 = vld [vmem:[%s1795_s0 + $0x8] ss:$20 sps:$4 sm:$0xff]  }
   0xe   :  { %1207 = vmatprep.subr.bf16.mxu1 %v1325_v13  ;;  %612 = vmatprep.mubr.bf16.mxu0 %v1346_v33  ;;  %v1353_v38 = vld [vmem:[%s1795_s0 + $0x34] ss:$20 sps:$4 sm:$0xff]   ;;  %v1356_v40 = vld [vmem:[%s1795_s0 + $0x30] ss:$20 sps:$4 sm:$0xff]   ;;  %v1362_v45 = vld [vmem:[%s1795_s0 + $0x58] ss:$20 sps:$4 sm:$0xff]  }
   0xf   :  { %v1355_v39 = vld [vmem:[%s1795_s0 + $0x28] ss:$20 sps:$4 sm:$0xff]   ;;  %v1361_v44 = vld [vmem:[%s1795_s0 + $0x50] ss:$20 sps:$4 sm:$0xff]   ;;  %v1368_v50 = vld [vmem:[%s1795_s0 + $0x78] ss:$20 sps:$4 sm:$0xff]  }
  0x10   :  { %1144 = vmatpush3.bf16.msra.mxu0 %v1326_v14  ;;  %v1357_v41 = vld [vmem:[%s1795_s0 + $0x54] ss:$20 sps:$4 sm:$0xff]   ;;  %v1359_v43 = vld [vmem:[%s1795_s0 + $0x5c] ss:$20 sps:$4 sm:$0xff]   ;;  %v1366_v48 = vld [vmem:[%s1795_s0 + $0x84] ss:$20 sps:$4 sm:$0xff]  }
  0x11   :  { %1208 = vmatpush3.bf16.msra.mxu1 %v1327_v15  ;;  %1145 = vmatprep.subr.bf16.mxu0 %v1328_v16  ;;  %v1376_v46 = vld [vmem:[%s1796_s1 + $0x110] sm:$0xff]   ;;  %v1389_v49 = vld [vmem:[%s1796_s1 + $0x118] sm:$0xff]   ;;  %v1372_v53 = vld [vmem:[%s1795_s0 + $0xac] ss:$20 sps:$4 sm:$0xff]  }
  0x12   :  { %1209 = vmatprep.subr.bf16.mxu1 %v1329_v17  ;;  %v1364_v47 = vld [vmem:[%s1795_s0 + $0x7c] ss:$20 sps:$4 sm:$0xff]   ;;  %v1369_v51 = vld [vmem:[%s1795_s0 + $0x80] ss:$20 sps:$4 sm:$0xff]   ;;  %v1370_v52 = vld [vmem:[%s1795_s0 + $0xa4] ss:$20 sps:$4 sm:$0xff]  }
  0x13   :  { %v1374_v54 = vld [vmem:[%s1795_s0 + $0xa0] ss:$20 sps:$4 sm:$0xff]   ;;  %v1375_v55 = vld [vmem:[%s1795_s0 + $0xa8] ss:$20 sps:$4 sm:$0xff]  }
  0x14   :  { %1146 = vmatpush3.bf16.msra.mxu0 %v1330_v18  ;;  %v1377_v56 = vld [vmem:[%s1795_s0 + $0xcc] ss:$20 sps:$4 sm:$0xff]  }
  0x15   :  { %1210 = vmatpush3.bf16.msra.mxu1 %v1331_v19  ;;  %1147 = vmatprep.subr.bf16.mxu0 %v1332_v20 }
  0x16   :  { %1211 = vmatprep.subr.bf16.mxu1 %v1333_v21 }
  0x18   :  { %1148 = vmatpush3.bf16.msra.mxu0 %v1334_v22 }
  0x19   :  { %1212 = vmatpush3.bf16.msra.mxu1 %v1335_v23  ;;  %1149 = vmatprep.subr.bf16.mxu0 %v1336_v24 }
  0x1a   :  { %1213 = vmatprep.subr.bf16.mxu1 %v1337_v25 }
  0x1c   :  { %1150 = vmatpush3.bf16.msra.mxu0 %v1338_v26 }
  0x1d   :  { %1214 = vmatpush3.bf16.msra.mxu1 %v1339_v27  ;;  %1151 = vmatprep.subr.bf16.mxu0 %v1340_v28 }
  0x1e   :  { %1215 = vmatprep.subr.bf16.mxu1 %v1341_v29 }
  0x20   :  { %1152 = vmatpush3.bf16.msra.mxu0 %v1342_v30 }
  0x21   :  { %1216 = vmatpush3.bf16.msra.mxu1 %v1343_v31  ;;  %1277 = vmatprep.subr.bf16.mxu0 %v1350_v36 }
  0x22   :  { %1301 = vmatprep.subr.bf16.mxu1 %v1350_v36 }
  0x23   :  { %613 = vmatmul.mubr.bf16.vlgmr.msra.gmra.mrb[0].mxu0 %v1344_v32 }
  0x24   :  { %710 = vmatmul.mubr.bf16.vlgmr.msra.gmra.mrb[0].mxu1 %v1347_v34  ;;  %1278 = vmatpush3.bf16.msra.mxu0 %v1350_v36 }
  0x25   :  { %1305 = vmatpush3.bf16.msra.mxu1 %v1350_v36  ;;  %620 = vmatprep.mubr.bf16.mxu0 %v1351_v37 }
  0x26   :  { %717 = vmatprep.mubr.bf16.mxu1 %v1353_v38  ;;  %1279 = vmatprep.subr.bf16.mxu0 %v1363_v42 }
  0x27   :  { %1302 = vmatprep.subr.bf16.mxu1 %v1363_v42 }
  0x28   :  { %1280 = vmatpush3.bf16.msra.mxu0 %v1363_v42 }
  0x29   :  { %1306 = vmatpush3.bf16.msra.mxu1 %v1363_v42  ;;  %1281 = vmatprep.subr.bf16.mxu0 %v1376_v46 }
  0x2a   :  { %1303 = vmatprep.subr.bf16.mxu1 %v1376_v46 }
  0x2b   :  { %621 = vmatmul.mubr.bf16.gmra.mrb[4].mxu0 %v1355_v39 }
  0x2c   :  { %718 = vmatmul.mubr.bf16.gmra.mrb[4].mxu1 %v1356_v40  ;;  %628 = vmatprep.mubr.bf16.mxu0 %v1357_v41 }
  0x2d   :  { %725 = vmatprep.mubr.bf16.mxu1 %v1359_v43  ;;  %1282 = vmatpush3.bf16.msra.mxu0 %v1376_v46 }
  0x2e   :  { %1307 = vmatpush3.bf16.msra.mxu1 %v1376_v46  ;;  %1283 = vmatprep.subr.bf16.mxu0 %v1389_v49 }
  0x2f   :  { %1304 = vmatprep.subr.bf16.mxu1 %v1389_v49 }
  0x31   :  { %1284 = vmatpush3.bf16.msra.mxu0 %v1389_v49 }
  0x32   :  { %1308 = vmatpush3.bf16.msra.mxu1 %v1389_v49 }
  0x33   :  { %629 = vmatmul.mubr.bf16.gmra.mrb[8].mxu0 %v1361_v44 }
  0x34   :  { %726 = vmatmul.mubr.bf16.gmra.mrb[8].mxu1 %v1362_v45  ;;  %636 = vmatprep.mubr.bf16.mxu0 %v1364_v47 }
  0x35   :  { %733 = vmatprep.mubr.bf16.mxu1 %v1366_v48 }
  0x3b   :  { %637 = vmatmul.mubr.bf16.gmra.mrb[12].mxu0 %v1368_v50 }
  0x3c   :  { %734 = vmatmul.mubr.bf16.gmra.mrb[12].mxu1 %v1369_v51  ;;  %644 = vmatprep.mubr.bf16.mxu0 %v1370_v52 }
  0x3d   :  { %741 = vmatprep.mubr.bf16.mxu1 %v1372_v53 }
  0x3e   :  { %9 = vsyncpa [#allocation3], 0  ;;  %v1379_v57 = vld [vmem:[%s1795_s0 + $0xd4] ss:$20 sps:$4 sm:$0xff]   ;;  %v1382_v59 = vld [vmem:[%s1795_s0 + $0xd0] ss:$20 sps:$4 sm:$0xff]  }
  0x3f   :  { %v1381_v58 = vld [vmem:[%s1795_s0 + $0xc8] ss:$20 sps:$4 sm:$0xff]   ;;  %v1387_v62 = vld [vmem:[%s1795_s0 + $0xf0] ss:$20 sps:$4 sm:$0xff]   ;;  %v1388_v63 = vld [vmem:[%s1795_s0 + $0xf8] ss:$20 sps:$4 sm:$0xff]  }
  0x40   :  { %v1383_v60 = vld [vmem:[%s1795_s0 + $0xf4] ss:$20 sps:$4 sm:$0xff]   ;;  %v1385_v61 = vld [vmem:[%s1795_s0 + $0xfc] ss:$20 sps:$4 sm:$0xff]   ;;  %v1392_v1 = vld [vmem:[%s1795_s0 + $0x124] ss:$20 sps:$4 sm:$0xff]  }
  0x41   :  { %v1390_v0 = vld [vmem:[%s1795_s0 + $0x11c] ss:$20 sps:$4 sm:$0xff]   ;;  %v1394_v2 = vld [vmem:[%s1795_s0 + $0x118] ss:$20 sps:$4 sm:$0xff]   ;;  %v1395_v3 = vld [vmem:[%s1795_s0 + $0x120] ss:$20 sps:$4 sm:$0xff]  }
  0x42   :  { %v1396_v4 = vld [vmem:[%s1795_s0 + $0x10] ss:$20 sps:$4 sm:$0xff]   ;;  %vm555_vm0 = vcmask 523264   ;;  %v1398_v6 = vld [vmem:[%s1795_s0 + $0x38] ss:$20 sps:$4 sm:$0xff]  }
  0x43   :  { %645 = vmatmul.mubr.bf16.gmra.mrb[16].mxu0 %v1374_v54  ;;  %v1397_v5 = vld [vmem:[%s1795_s0 + $0xb0] ss:$20 sps:$4 sm:$0xff]   ;;  %v1399_v7 = vld [vmem:[%s1795_s0 + $0xd8] ss:$20 sps:$4 sm:$0xff]   ;;  %v1400_v8 = vld [vmem:[%s1795_s0 + $0x60] ss:$20 sps:$4 sm:$0xff]  }
  0x44   :  { %742 = vmatmul.mubr.bf16.gmra.mrb[16].mxu1 %v1375_v55  ;;  %652 = vmatprep.mubr.bf16.mxu0 %v1377_v56  ;;  %v1401_v9 = vld [vmem:[%s1795_s0 + $0x100] ss:$20 sps:$4 sm:$0xff]   ;;  %v1402_v10 = vld [vmem:[%s1795_s0 + $0x88] ss:$20 sps:$4 sm:$0xff]  }
  0x45   :  { %749 = vmatprep.mubr.bf16.mxu1 %v1379_v57  ;;  %v1403_v11 = vld [vmem:[%s1795_s0 + $0x128] ss:$20 sps:$4 sm:$0xff]  }
  0x4b   :  { %653 = vmatmul.mubr.bf16.gmra.mrb[20].mxu0 %v1381_v58 }
  0x4c   :  { %750 = vmatmul.mubr.bf16.gmra.mrb[20].mxu1 %v1382_v59  ;;  %660 = vmatprep.mubr.bf16.mxu0 %v1383_v60 }
  0x4d   :  { %757 = vmatprep.mubr.bf16.mxu1 %v1385_v61 }
  0x53   :  { %661 = vmatmul.mubr.bf16.gmra.mrb[24].mxu0 %v1387_v62 }
  0x54   :  { %758 = vmatmul.mubr.bf16.gmra.mrb[24].mxu1 %v1388_v63  ;;  %668 = vmatprep.mubr.bf16.mxu0 %v1390_v0 }
  0x55   :  { %765 = vmatprep.mubr.bf16.mxu1 %v1392_v1 }
  0x5b   :  { %669 = vmatmul.mubr.bf16.gmra.mrb[28].mxu0 %v1394_v2 }
  0x5c   :  { %766 = vmatmul.mubr.bf16.gmra.mrb[28].mxu1 %v1395_v3  ;;  %1285 = vmatprep.mubr.msk.bf16.mxu0 %vm555_vm0, %v1396_v4 }
  0x5d   :  { %1293 = vmatprep.mubr.msk.bf16.mxu1 %vm555_vm0, %v1397_v5 }
  0x63   :  { %1286 = vmatmul.mubr.msk.bf16.vlgmr.msra.gmra.mrb[32].mxu0 %vm555_vm0, %v1398_v6 }
  0x64   :  { %1294 = vmatmul.mubr.msk.bf16.vlgmr.msra.gmra.mrb[32].mxu1 %vm555_vm0, %v1399_v7  ;;  %1289 = vmatprep.mubr.msk.bf16.mxu0 %vm555_vm0, %v1400_v8 }
  0x65   :  { %1297 = vmatprep.mubr.msk.bf16.mxu1 %vm555_vm0, %v1401_v9 }
  0x6b   :  { %1290 = vmatmul.mubr.msk.bf16.gmra.mrb[36].mxu0 %vm555_vm0, %v1402_v10 }
  0x6c   :  { %1298 = vmatmul.mubr.msk.bf16.gmra.mrb[36].mxu1 %vm555_vm0, %v1403_v11 }
  0xf6   :  { %v1153_v12 = vpop.f32.mrb[0].mxu0 }
  0xf7   :  { %v1217_v13 = vpop.f32.mrb[0].mxu1  ;;  %v1154_v14 = vpop.f32.mrb[1].mxu0 }
  0xf8   :  { %v1155_v15 = vadd.f32 %v1154_v14, %v1153_v12  ;;  %v1218_v16 = vpop.f32.mrb[1].mxu1  ;;  %v1156_v17 = vpop.f32.mrb[2].mxu0 }
  0xf9   :  { %v1219_v18 = vadd.f32 %v1218_v16, %v1217_v13  ;;  %v1220_v19 = vpop.f32.mrb[2].mxu1  ;;  %v1157_v20 = vpop.f32.mrb[3].mxu0 }
  0xfa   :  { %v1158_v21 = vadd.f32 %v1157_v20, %v1156_v17  ;;  %v1221_v22 = vpop.f32.mrb[3].mxu1 }
  0xfb   :  { %v1222_v23 = vadd.f32 %v1221_v22, %v1220_v19  ;;  %v1692_v24 = vadd.f32 %v1219_v18, %v1155_v15 }
  0xfd   :  { %v1694_v25 = vadd.f32 %v1222_v23, %v1158_v21 }
  0xfe   :  { %v1159_v26 = vpop.f32.mrb[4].mxu0 }
  0xff   :  { %v1223_v27 = vpop.f32.mrb[4].mxu1  ;;  %v1160_v28 = vpop.f32.mrb[5].mxu0 }
 0x100   :  { %v1161_v29 = vadd.f32 %v1160_v28, %v1159_v26  ;;  %v1224_v30 = vpop.f32.mrb[5].mxu1  ;;  %v1162_v31 = vpop.f32.mrb[6].mxu0 }
 0x101   :  { %v1225_v32 = vadd.f32 %v1224_v30, %v1223_v27  ;;  %v1226_v33 = vpop.f32.mrb[6].mxu1  ;;  %v1163_v34 = vpop.f32.mrb[7].mxu0 }
 0x102   :  { %v1164_v35 = vadd.f32 %v1163_v34, %v1162_v31  ;;  %v1227_v36 = vpop.f32.mrb[7].mxu1 }
 0x103   :  { %v1228_v37 = vadd.f32 %v1227_v36, %v1226_v33  ;;  %v1696_v38 = vadd.f32 %v1225_v32, %v1161_v29 }
 0x105   :  { %v1698_v39 = vadd.f32 %v1228_v37, %v1164_v35 }
 0x106   :  { %v1165_v40 = vpop.f32.mrb[8].mxu0 }
 0x107   :  { %v1229_v41 = vpop.f32.mrb[8].mxu1  ;;  %v1166_v42 = vpop.f32.mrb[9].mxu0 }
 0x108   :  { %v1167_v43 = vadd.f32 %v1166_v42, %v1165_v40  ;;  %v1230_v44 = vpop.f32.mrb[9].mxu1  ;;  %v1168_v45 = vpop.f32.mrb[10].mxu0 }
 0x109   :  { %v1231_v46 = vadd.f32 %v1230_v44, %v1229_v41  ;;  %v1232_v47 = vpop.f32.mrb[10].mxu1  ;;  %v1169_v48 = vpop.f32.mrb[11].mxu0 }
 0x10a   :  { %v1170_v49 = vadd.f32 %v1169_v48, %v1168_v45  ;;  %v1233_v50 = vpop.f32.mrb[11].mxu1 }
 0x10b   :  { %v1234_v51 = vadd.f32 %v1233_v50, %v1232_v47  ;;  %v1700_v52 = vadd.f32 %v1231_v46, %v1167_v43 }
 0x10d   :  { %v1702_v53 = vadd.f32 %v1234_v51, %v1170_v49 }
 0x10e   :  { %v1171_v54 = vpop.f32.mrb[12].mxu0 }
 0x10f   :  { %v1235_v55 = vpop.f32.mrb[12].mxu1  ;;  %v1172_v56 = vpop.f32.mrb[13].mxu0 }
 0x110   :  { %v1173_v57 = vadd.f32 %v1172_v56, %v1171_v54  ;;  %v1236_v58 = vpop.f32.mrb[13].mxu1  ;;  %v1174_v59 = vpop.f32.mrb[14].mxu0 }
 0x111   :  { %v1237_v60 = vadd.f32 %v1236_v58, %v1235_v55  ;;  %v1238_v61 = vpop.f32.mrb[14].mxu1  ;;  %v1175_v62 = vpop.f32.mrb[15].mxu0 }
 0x112   :  { %v1176_v63 = vadd.f32 %v1175_v62, %v1174_v59  ;;  %v1239_v0 = vpop.f32.mrb[15].mxu1 }
 0x113   :  { %v1240_v1 = vadd.f32 %v1239_v0, %v1238_v61  ;;  %v1704_v2 = vadd.f32 %v1237_v60, %v1173_v57 }
 0x115   :  { %v1706_v3 = vadd.f32 %v1240_v1, %v1176_v63 }
 0x116   :  { %v1177_v4 = vpop.f32.mrb[16].mxu0 }
 0x117   :  { %v1241_v5 = vpop.f32.mrb[16].mxu1  ;;  %v1178_v6 = vpop.f32.mrb[17].mxu0 }
 0x118   :  { %v1179_v7 = vadd.f32 %v1178_v6, %v1177_v4  ;;  %v1242_v8 = vpop.f32.mrb[17].mxu1  ;;  %v1180_v9 = vpop.f32.mrb[18].mxu0 }
 0x119   :  { %v1243_v10 = vadd.f32 %v1242_v8, %v1241_v5  ;;  %v1244_v11 = vpop.f32.mrb[18].mxu1  ;;  %v1181_v12 = vpop.f32.mrb[19].mxu0  ;;  %v1719_v5 = vld [vmem:[%s1797_s2] ss:$0 sm:$0xff]  ;;  %s1428_s2 = smov [#allocation2]  }
 0x11a   :  { %v1182_v13 = vadd.f32 %v1181_v12, %v1180_v9  ;;  %v1245_v14 = vpop.f32.mrb[19].mxu1  ;;  %v1725_v9 = vld [vmem:[%s1798_s3] ss:$0 sm:$0xff]  ;;  %s1040_s3 = sshll.u32 %s1428_s2, 4  ;;  %s1776_s3 = int_to_ptr.vmem [resolvable:$true] %s1040_s3 }
 0x11b   :  { %v1246_v15 = vadd.f32 %v1245_v14, %v1244_v11  ;;  %v744_v16 = vadd.f32 %v1243_v10, %v1179_v7  ;;  %s1404_s12 = scalar_lea.vmem %s1776_s3, 512  ;;  %p1409_p1 = scmp.lt.s32.totalorder %s1776_s3, %s1776_s3 }
 0x11c   :  { %p1405_p0 = scmp.ne.s32.totalorder %s1776_s3, %s1404_s12  ;;  %p1410_p2 = scmp.lt.s32.totalorder %s1404_s12, %s1404_s12 }
 0x11d   :  { %v1708_v17 = vadd.f32 %v1246_v15, %v1182_v13 }
 0x11e   :  { %v1183_v18 = vpop.f32.mrb[20].mxu0  ;;  %p1411_p3 = por %p1410_p2, %p1409_p1 }
 0x11f   :  { %v1247_v19 = vpop.f32.mrb[20].mxu1  ;;  %v1184_v20 = vpop.f32.mrb[21].mxu0 }
 0x120   :  { %v1185_v21 = vadd.f32 %v1184_v20, %v1183_v18  ;;  %v1248_v22 = vpop.f32.mrb[21].mxu1  ;;  %v1186_v23 = vpop.f32.mrb[22].mxu0  ;;  %p1412_p4 = pnand %p1411_p3, %p1405_p0 }
 0x121   :  { %v1249_v26 = vadd.f32 %v1248_v22, %v1247_v19  ;;  %v1250_v27 = vpop.f32.mrb[22].mxu1  ;;  %v1187_v28 = vpop.f32.mrb[23].mxu0 }
 0x122   :  { %v1188_v29 = vadd.f32 %v1187_v28, %v1186_v23  ;;  %v1251_v30 = vpop.f32.mrb[23].mxu1 }
 0x123   :  { %v1252_v31 = vadd.f32 %v1251_v30, %v1250_v27  ;;  %v752_v32 = vadd.f32 %v1249_v26, %v1185_v21 }
 0x125   :  { %v755_v33 = vadd.f32 %v1252_v31, %v1188_v29 }
 0x126   :  { %v1189_v34 = vpop.f32.mrb[24].mxu0 }
 0x127   :  { %v1253_v35 = vpop.f32.mrb[24].mxu1  ;;  %v1190_v36 = vpop.f32.mrb[25].mxu0 }
 0x128   :  { %v1191_v37 = vadd.f32 %v1190_v36, %v1189_v34  ;;  %v1254_v40 = vpop.f32.mrb[25].mxu1  ;;  %v1192_v41 = vpop.f32.mrb[26].mxu0 }
 0x129   :  { %v1255_v42 = vadd.f32 %v1254_v40, %v1253_v35  ;;  %v1256_v43 = vpop.f32.mrb[26].mxu1  ;;  %v1193_v44 = vpop.f32.mrb[27].mxu0 }
 0x12a   :  { %v1194_v45 = vadd.f32 %v1193_v44, %v1192_v41  ;;  %v1257_v46 = vpop.f32.mrb[27].mxu1 }
 0x12b   :  { %v1258_v47 = vadd.f32 %v1257_v46, %v1256_v43  ;;  %v1710_v48 = vadd.f32 %v1255_v42, %v1191_v37 }
 0x12d   :  { %v1712_v49 = vadd.f32 %v1258_v47, %v1194_v45 }
 0x12e   :  { %v1195_v50 = vpop.f32.mrb[28].mxu0 }
 0x12f   :  { %v1259_v51 = vpop.f32.mrb[28].mxu1  ;;  %v1196_v54 = vpop.f32.mrb[29].mxu0 }
 0x130   :  { %v1197_v55 = vadd.f32 %v1196_v54, %v1195_v50  ;;  %v1260_v56 = vpop.f32.mrb[29].mxu1  ;;  %v1198_v57 = vpop.f32.mrb[30].mxu0 }
 0x131   :  { %v1261_v58 = vadd.f32 %v1260_v56, %v1259_v51  ;;  %v1262_v59 = vpop.f32.mrb[30].mxu1  ;;  %v1199_v60 = vpop.f32.mrb[31].mxu0 }
 0x132   :  { %v1200_v61 = vadd.f32 %v1199_v60, %v1198_v57  ;;  %v1263_v62 = vpop.f32.mrb[31].mxu1 }
 0x133   :  { %v1264_v63 = vadd.f32 %v1263_v62, %v1262_v59  ;;  %v768_v0 = vadd.f32 %v1261_v58, %v1197_v55 }
 0x135   :  { %v1714_v1 = vadd.f32 %v1264_v63, %v1200_v61 }
 0x136   :  { %v1287_v4 = vpop.f32.mrb[32].mxu0 }
 0x137   :  { %v817_v6 = vadd.f32 %v1287_v4, %v1696_v38  ;;  %v1295_v7 = vpop.f32.mrb[32].mxu1  ;;  %v808_v8 = vpop.f32.mrb[33].mxu0 }
 0x138   :  { %v849_v10 = vadd.f32 %v1295_v7, %v752_v32  ;;  %v809_v11 = vadd.f32 %v808_v8, %v1692_v24  ;;  %v840_v12 = vpop.f32.mrb[33].mxu1  ;;  %v1288_v13 = vpop.f32.mrb[34].mxu0 }
 0x139   :  { %v880_v14 = vmul.f32 %v1719_v5, %v817_v6  ;;  %v841_v15 = vadd.f32 %v840_v12, %v744_v16  ;;  %v820_v18 = vadd.f32 %v1288_v13, %v1698_v39  ;;  %v1296_v19 = vpop.f32.mrb[34].mxu1  ;;  %v811_v20 = vpop.f32.mrb[35].mxu0 }
 0x13a   :  { %v888_v38 = vmul.f32 %v1719_v5, %v849_v10  ;;  %v878_v21 = vmul.f32 %v1719_v5, %v809_v11  ;;  %v852_v22 = vadd.f32 %v1296_v19, %v755_v33  ;;  %v812_v23 = vadd.f32 %v811_v20, %v1694_v25  ;;  %v843_v26 = vpop.f32.mrb[35].mxu1 }
 0x13b   :  { %v903_v27 = vadd.f32 %v1725_v9, %v880_v14  ;;  %v886_v24 = vmul.f32 %v1719_v5, %v841_v15  ;;  %v881_v28 = vmul.f32 %v1719_v5, %v820_v18  ;;  %v844_v16 = vadd.f32 %v843_v26, %v1708_v17 }
 0x13c   :  { %v911_v39 = vadd.f32 %v1725_v9, %v888_v38  ;;  %v901_v29 = vadd.f32 %v1725_v9, %v878_v21  ;;  %v889_v30 = vmul.f32 %v1719_v5, %v852_v22  ;;  %v879_v31 = vmul.f32 %v1719_v5, %v812_v23 }
 0x13d   :  { %v909_v32 = vadd.f32 %v1725_v9, %v886_v24  ;;  %v887_v25 = vmul.f32 %v1719_v5, %v844_v16  ;;  %v919_v33 = vmax.f32 %v903_v27, 0.0  ;;  %v1744_v34 = vadd.f32 %v1725_v9, %v881_v28 }
 0x13e   :  { %v902_v35 = vadd.f32 %v1725_v9, %v879_v31  ;;  %v1291_v36 = vpop.f32.mrb[36].mxu0  ;;  %v927_v17 = vmax.f32 %v911_v39, 0.0  ;;  %v1748_v37 = vadd.f32 %v1725_v9, %v889_v30  ;;  %v917_v44 = vmax.f32 %v901_v29, 0.0 }
 0x13f   :  { %v910_v40 = vadd.f32 %v1725_v9, %v887_v25  ;;  %v833_v41 = vadd.f32 %v1291_v36, %v1704_v2  ;;  %v1299_v42 = vpop.f32.mrb[36].mxu1  ;;  %v824_v43 = vpop.f32.mrb[37].mxu0  ;;  %v925_v54 = vmax.f32 %v909_v32, 0.0  ;;  %v920_v60 = vmax.f32 %v1744_v34, 0.0 }
 0x140   :  { %v918_v45 = vmax.f32 %v902_v35, 0.0  ;;  %v865_v46 = vadd.f32 %v1299_v42, %v768_v0  ;;  %v825_v47 = vadd.f32 %v824_v43, %v1700_v52  ;;  %v856_v50 = vpop.f32.mrb[37].mxu1  ;;  %v1292_v51 = vpop.f32.mrb[38].mxu0  ;;  %v928_v63 = vmax.f32 %v1748_v37, 0.0 }
 0x141   :  { %v926_v55 = vmax.f32 %v910_v40, 0.0  ;;  %v857_v56 = vadd.f32 %v856_v50, %v1710_v48  ;;  %v836_v57 = vadd.f32 %v1292_v51, %v1706_v3  ;;  %v1300_v58 = vpop.f32.mrb[38].mxu1  ;;  %v827_v59 = vpop.f32.mrb[39].mxu0  ;;  %v884_v3 = vmul.f32 %v1719_v5, %v833_v41 }
 0x142   :  { %v933_v2 = vmax.f32 %v917_v44, %v918_v45  ;;  %v945_v61 = vmax.f32 %v918_v45, %v919_v33  ;;  %v859_v62 = vpop.f32.mrb[39].mxu1  ;;  %v882_v52 = vmul.f32 %v1719_v5, %v825_v47  ;;  %v892_v11 = vmul.f32 %v1719_v5, %v865_v46 }
 0x143   :  { %v984_v0 = vmax.f32 %v925_v54, %v926_v55  ;;  %v996_v4 = vmax.f32 %v926_v55, %v927_v17  ;;  %v890_v8 = vmul.f32 %v1719_v5, %v857_v56  ;;  %v868_v16 = vadd.f32 %v1300_v58, %v1714_v1 }
 0x144   :  { %v935_v6 = vrot.slane %v933_v2, 1  ;;  %v946_v7 = vmax.f32 %v945_v61, %v920_v60  ;;  %v939_v13 = vrot.slane %v933_v2, 2  ;;  %v905_v38 = vadd.f32 %v1725_v9, %v882_v52 }
 0x145   :  { %v986_v48 = vrot.slane %v984_v0, 1  ;;  %v997_v10 = vmax.f32 %v996_v4, %v928_v63  ;;  %v990_v15 = vrot.slane %v984_v0, 2  ;;  %v913_v26 = vadd.f32 %v1725_v9, %v890_v8 }
 0x146   :  { %v937_v12 = vmax.f32 %v933_v2, %v935_v6  ;;  %v948_v14 = vrot.slane %v946_v7, 1  ;;  %v952_v18 = vrot.slane %v946_v7, 2  ;;  %v921_v28 = vmax.f32 %v905_v38, 0.0 }
 0x147   :  { %v988_v19 = vmax.f32 %v984_v0, %v986_v48  ;;  %v999_v20 = vrot.slane %v997_v10, 1  ;;  %v1003_v23 = vrot.slane %v997_v10, 2  ;;  %v929_v29 = vmax.f32 %v913_v26, 0.0 }
 0x148   :  { %938 = vst [vmem:[#allocation2] sm:$0x1] %v937_v12  ;;  %v941_v21 = vmax.f32 %v937_v12, %v939_v13  ;;  %v950_v22 = vmax.f32 %v946_v7, %v948_v14  ;;  %v885_v30 = vmul.f32 %v1719_v5, %v836_v57  ;;  %v828_v31 = vadd.f32 %v827_v59, %v1702_v53 }
 0x149   :  { %989 = vst [vmem:[#allocation2 + $0x10] sm:$0x1] %v988_v19  ;;  %v992_v27 = vmax.f32 %v988_v19, %v990_v15  ;;  %v1001_v24 = vmax.f32 %v997_v10, %v999_v20  ;;  %v958_v25 = vmax.f32 %v920_v60, %v921_v28  ;;  %v893_v33 = vmul.f32 %v1719_v5, %v868_v16 }
 0x14a   :  { %942 = vst [vmem:[#allocation2] sm:$0x2] %v941_v21  ;;  %943 = vst [vmem:[#allocation2 - $0x1] sm:$0x8] %v941_v21  ;;  %v954_v39 = vmax.f32 %v950_v22, %v952_v18  ;;  %v860_v1 = vadd.f32 %v859_v62, %v1712_v49  ;;  %v907_v34 = vadd.f32 %v1725_v9, %v884_v3 }
 0x14b   :  { %944 = vst [vmem:[#allocation2 - $0x2] sm:$0x20] %v941_v21  ;;  %951 = vst [vmem:[#allocation2 + $0x4] sm:$0x1] %v950_v22  ;;  %v1005_v32 = vmax.f32 %v1001_v24, %v1003_v23  ;;  %v1009_v35 = vmax.f32 %v928_v63, %v929_v29  ;;  %v883_v36 = vmul.f32 %v1719_v5, %v828_v31 }
 0x14c   :  { %993 = vst [vmem:[#allocation2 + $0x10] sm:$0x2] %v992_v27  ;;  %994 = vst [vmem:[#allocation2 + $0xf] sm:$0x8] %v992_v27  ;;  %v915_v53 = vadd.f32 %v1725_v9, %v892_v11  ;;  %v891_v17 = vmul.f32 %v1719_v5, %v860_v1  ;;  %v908_v37 = vadd.f32 %v1725_v9, %v885_v30  ;;  %v923_v42 = vmax.f32 %v907_v34, 0.0 }
 0x14d   :  { %995 = vst [vmem:[#allocation2 + $0xe] sm:$0x20] %v992_v27  ;;  %1002 = vst [vmem:[#allocation2 + $0x14] sm:$0x1] %v1001_v24  ;;  %v906_v40 = vadd.f32 %v1725_v9, %v883_v36  ;;  %v916_v49 = vadd.f32 %v1725_v9, %v893_v33 }
 0x14e   :  { %955 = vst [vmem:[#allocation2 + $0x4] sm:$0x2] %v954_v39  ;;  %956 = vst [vmem:[#allocation2 + $0x3] sm:$0x8] %v954_v39  ;;  %v914_v41 = vadd.f32 %v1725_v9, %v891_v17  ;;  %v931_v44 = vmax.f32 %v915_v53, 0.0  ;;  %v924_v46 = vmax.f32 %v908_v37, 0.0 }
 0x14f   :  { %957 = vst [vmem:[#allocation2 + $0x2] sm:$0x20] %v954_v39  ;;  %1006 = vst [vmem:[#allocation2 + $0x14] sm:$0x2] %v1005_v32  ;;  %v922_v43 = vmax.f32 %v906_v40, 0.0  ;;  %v932_v51 = vmax.f32 %v916_v49, 0.0 }
 0x150   :  { %1007 = vst [vmem:[#allocation2 + $0x13] sm:$0x8] %v1005_v32  ;;  %1008 = vst [vmem:[#allocation2 + $0x12] sm:$0x20] %v1005_v32  ;;  %v930_v45 = vmax.f32 %v914_v41, 0.0 }
 0x151   :  { %v959_v47 = vmax.f32 %v958_v25, %v922_v43  ;;  %v971_v50 = vmax.f32 %v922_v43, %v923_v42 }
 0x152   :  { %v1010_v54 = vmax.f32 %v1009_v35, %v930_v45  ;;  %v1022_v55 = vmax.f32 %v930_v45, %v931_v44 }
 0x153   :  { %v961_v56 = vrot.slane %v959_v47, 1  ;;  %v972_v5 = vmax.f32 %v971_v50, %v924_v46  ;;  %v965_v60 = vrot.slane %v959_v47, 2 }
 0x154   :  { %v1012_v57 = vrot.slane %v1010_v54, 1  ;;  %v1023_v58 = vmax.f32 %v1022_v55, %v932_v51  ;;  %v1016_v62 = vrot.slane %v1010_v54, 2 }
 0x155   :  { %v963_v59 = vmax.f32 %v959_v47, %v961_v56  ;;  %v974_v2 = vrot.slane %v972_v5, 1  ;;  %v978_v4 = vrot.slane %v972_v5, 2 }
 0x156   :  { %v1014_v61 = vmax.f32 %v1010_v54, %v1012_v57  ;;  %v1025_v9 = vrot.slane %v1023_v58, 1  ;;  %v1029_v7 = vrot.slane %v1023_v58, 2 }
 0x157   :  { %964 = vst [vmem:[#allocation2 + $0x8] sm:$0x1] %v963_v59  ;;  %v967_v63 = vmax.f32 %v963_v59, %v965_v60  ;;  %v976_v0 = vmax.f32 %v972_v5, %v974_v2 }
 0x158   :  { %1015 = vst [vmem:[#allocation2 + $0x18] sm:$0x1] %v1014_v61  ;;  %v1018_v52 = vmax.f32 %v1014_v61, %v1016_v62  ;;  %v1027_v6 = vmax.f32 %v1023_v58, %v1025_v9 }
 0x159   :  { %968 = vst [vmem:[#allocation2 + $0x8] sm:$0x2] %v967_v63  ;;  %969 = vst [vmem:[#allocation2 + $0x7] sm:$0x8] %v967_v63  ;;  %v980_v8 = vmax.f32 %v976_v0, %v978_v4 }
 0x15a   :  { %970 = vst [vmem:[#allocation2 + $0x6] sm:$0x20] %v967_v63  ;;  %977 = vst [vmem:[#allocation2 + $0xc] sm:$0x1] %v976_v0  ;;  %v1031_v48 = vmax.f32 %v1027_v6, %v1029_v7 }
 0x15b   :  { %1019 = vst [vmem:[#allocation2 + $0x18] sm:$0x2] %v1018_v52  ;;  %1020 = vst [vmem:[#allocation2 + $0x17] sm:$0x8] %v1018_v52 }
 0x15c   :  { %1021 = vst [vmem:[#allocation2 + $0x16] sm:$0x20] %v1018_v52  ;;  %1028 = vst [vmem:[#allocation2 + $0x1c] sm:$0x1] %v1027_v6 }
 0x15d   :  { %981 = vst [vmem:[#allocation2 + $0xc] sm:$0x2] %v980_v8  ;;  %982 = vst [vmem:[#allocation2 + $0xb] sm:$0x8] %v980_v8 }
 0x15e   :  { %983 = vst [vmem:[#allocation2 + $0xa] sm:$0x20] %v980_v8  ;;  %1032 = vst [vmem:[#allocation2 + $0x1c] sm:$0x2] %v1031_v48 }
 0x15f   :  { %1033 = vst [vmem:[#allocation2 + $0x1b] sm:$0x8] %v1031_v48  ;;  %1034 = vst [vmem:[#allocation2 + $0x1a] sm:$0x20] %v1031_v48 }
 0x160   :  { %1415 = shalt.err (!%p1412_p4)
}
 0x161   :  { %s1416_s15 = scalar_lea.hbm %s1799_s4, 512 }
 0x162   :  { %p1417_p5 = scmp.ne.s32.totalorder %s1799_s4, %s1416_s15  ;;  %p1420_p6 = scmp.lt.u32.totalorder %s1416_s15, %s1799_s4 }
 0x164   :  { %p1422_p7 = pnand %p1420_p6, %p1417_p5 }
 0x166   :  { %1425 = shalt.err (!%p1422_p7)
}
 0x167   :  { %s1429_s19 = smov 128   ;;  %s1430_s20 = smov 8  }
 0x168   :  { %1046 = dma.vmem_to_hbm [thread:$0]  %s1776_s3, 512, %s1799_s4, [#allocation3], %s1429_s19, %s1429_s19, %s1430_s20  }
 0x169   :  { %1426 = dma.done.wait [#allocation3], 512  }
 0x16a   :  { %1427 = vsyncadd [#allocation3], 4294966784 }
 0x16b   :  { %1050 = vsyncpa [#allocation3], 1 }

</bundles_post_ra>
